<compile_context>
chip_gen: v6e
topology: v6e:2x2x1
jax: 0.10.0
libtpu: 0.0.40
codegen_flags: <defaults>
</compile_context>

<pallas_src>
import functools
import math

import jax
import jax.numpy as jnp
from jax.experimental import pallas as pl
from jax.experimental.pallas import tpu as pltpu

_H1 = 64      # lin01 output width
_H1P = 128    # 64 padded to one full lane tile
_H2 = 512     # lin02 output width


def _round_up(n, m):
    return (n + m - 1) // m * m


def _hypernet_kernel(x_ref, wxab_ref, bab_ref, w2a_ref, w3b_ref, b3_ref, w3a_ref,
                     out_ref, *, h1p, out_sz):
    # x tile -> bf16 for the MXU; accumulate in f32.
    x = x_ref[...].astype(jnp.bfloat16)                                   # (TB, In)

    # Fused x-contributions to layers 1 & 2: x @ [W1p | W2b] + [b1p | b2].
    xw = jnp.dot(x, wxab_ref[...], preferred_element_type=jnp.float32) + bab_ref[...]

    # layer 1: ReLU(lin01(x)).  Columns [64:128) are exact zeros (zero-padded
    # weights/bias) and the matching rows of w2a are zero, so the pad is exact.
    h1 = jnp.maximum(xw[:, :h1p], 0.0).astype(jnp.bfloat16)               # (TB, 128)

    # layer 2: ReLU(lin02(cat(h1, x))) = ReLU(h1 @ W2a + (x @ W2b + b2)).
    a2 = jnp.dot(h1, w2a_ref[...], preferred_element_type=jnp.float32) + xw[:, h1p:]
    h2 = jnp.maximum(a2, 0.0).astype(jnp.bfloat16)                        # (TB, 512)

    # x-contribution to layer 3 computed right before its single use so the
    # (TB, out_pad) f32 block is not live across the earlier matmuls.
    xc = jnp.dot(x, w3b_ref[...], preferred_element_type=jnp.float32) + b3_ref[...]

    # layer 3: lin05(cat(h2, x)) = h2 @ W3a + (x @ W3b + b3)  (no activation).
    out = jnp.dot(h2, w3a_ref[...], preferred_element_type=jnp.float32) + xc

    # Store only the real out_sz columns (unpadded f32 HBM writeback).
    out_ref[...] = out[:, :out_sz].astype(out_ref.dtype)                  # (TB, out_sz)


def prepare_params(params):
    """One-time: transpose / split / zero-pad / bf16-cast the PyTorch-layout weights."""
    out_sz = params["lin05_w"].shape[0]
    out_pad = _round_up(out_sz, 128)

    w1 = params["lin01_w"].T            # (In, 64)
    b1 = params["lin01_b"]
    w2 = params["lin02_w"].T            # (64+In, 512)
    b2 = params["lin02_b"]
    w3 = params["lin05_w"].T            # (512+In, Out)
    b3 = params["lin05_b"]

    # Pad h1 width 64 -> 128 with zeros; ReLU(0)=0 and w2a's extra rows are zero -> exact.
    w1p = jnp.pad(w1, ((0, 0), (0, _H1P - _H1)))                          # (In, 128)
    b1p = jnp.pad(b1, (0, _H1P - _H1))                                    # (128,)
    w2a = jnp.pad(w2[:_H1, :], ((0, _H1P - _H1), (0, 0)))                 # (128, 512)
    w2b = w2[_H1:, :]                                                     # (In, 512)
    # Pad output columns Out -> OutP with zeros (used only inside the kernel;
    # the padded columns are never written back to HBM).
    w3a = jnp.pad(w3[:_H2, :], ((0, 0), (0, out_pad - out_sz)))           # (512, OutP)
    w3b = jnp.pad(w3[_H2:, :], ((0, 0), (0, out_pad - out_sz)))           # (In, OutP)
    b3p = jnp.pad(b3, (0, out_pad - out_sz))                              # (OutP,)

    wx_ab = jnp.concatenate([w1p, w2b], axis=1).astype(jnp.bfloat16)      # (In, 640)
    b_ab = jnp.concatenate([b1p, b2])[None, :].astype(jnp.float32)        # (1, 640)

    return {
        "wx_ab": wx_ab,
        "b_ab": b_ab,
        "w2a": w2a.astype(jnp.bfloat16),
        "w3b": w3b.astype(jnp.bfloat16),
        "b3": b3p[None, :].astype(jnp.float32),
        "w3a": w3a.astype(jnp.bfloat16),
        "out_size": int(out_sz),
        "out_pad": int(out_pad),
    }


def _pick_tile_b(B, in_sz, out_sz, out_pad, block_b):
    """Batch tile: multiple of 8, VMEM-budget aware, >=2 grid steps for big batches."""
    tb = min(block_b, _round_up(B, 8))
    tb = max(8, _round_up(tb, 8))
    # VMEM-aware cap: f32 intermediates + double-buffered I/O tiles per row, against a
    # ~24 MiB budget so the whole working set fits comfortably even in v7x's 64 MiB.
    per_row = 4 * (_H1P + 2 * _H2 + 3 * out_pad + 2 * in_sz + 2 * out_sz)
    cap = max(128, ((24 << 20) // per_row) // 8 * 8)
    tb = min(tb, cap)
    # v7x megacore: give the "parallel" batch axis >=2 grid steps when the batch is
    # big enough to split (harmless on single-TC v5e/v6e since TB stays >=128).
    if B >= 256:
        tb = min(tb, max(128, _round_up((B + 1) // 2, 8)))
    return max(8, tb)


def hypernetwork_forward(x, prep, *, block_b=256):
    """x: (B, input_size) float32.  prep: output of prepare_params()."""
    B, in_sz = x.shape
    out_sz, out_pad = prep["out_size"], prep["out_pad"]
    wx_ab, b_ab = prep["wx_ab"], prep["b_ab"]
    w2a, w3b, b3, w3a = prep["w2a"], prep["w3b"], prep["b3"], prep["w3a"]

    TB = _pick_tile_b(B, in_sz, out_sz, out_pad, block_b)
    B_pad = _round_up(B, TB)
    if B_pad != B:
        x = jnp.pad(x, ((0, B_pad - B), (0, 0)))
    grid = (B_pad // TB,)

    kernel = functools.partial(_hypernet_kernel, h1p=_H1P, out_sz=out_sz)

    # Advisory cost estimate (padded MXU work + real HBM traffic).
    weight_bytes = ((wx_ab.size + w2a.size + w3b.size + w3a.size) * 2
                    + (b_ab.size + b3.size) * 4)
    cost = pl.CostEstimate(
        flops=2 * B_pad * (in_sz * (_H1P + _H2) + _H1P * _H2
                           + in_sz * out_pad + _H2 * out_pad),
        transcendentals=0,
        bytes_accessed=B_pad * in_sz * 4 + B_pad * out_sz * 4 + weight_bytes)

    # Explicit VMEM budget from the actual buffers (2x headroom + 4 MiB slack),
    # clamped to v7x's 64 MiB physical VMEM.
    io_vmem = 2 * TB * in_sz * 4 + 2 * TB * out_sz * 4
    interm_vmem = TB * (_H1P + 2 * _H2 + 3 * out_pad) * 4
    vmem_limit = int(2 * (weight_bytes + io_vmem + interm_vmem) + (4 << 20))
    vmem_limit = max(16 << 20, min(64 << 20, vmem_limit))

    out_shape = jax.ShapeDtypeStruct((B_pad, out_sz), jnp.float32)
    x_spec = pl.BlockSpec((TB, in_sz), lambda i: (i, 0))
    out_spec = pl.BlockSpec((TB, out_sz), lambda i: (i, 0))
    cparams = pltpu.CompilerParams(dimension_semantics=("parallel",),
                                   vmem_limit_bytes=vmem_limit)

    def run(single_buffer_weights):
        if single_buffer_weights:
            # Constant index_map -> DMA'd once; request a single VMEM buffer.
            resident = functools.partial(pl.BlockSpec, pipeline_mode=pl.Buffered(1))
        else:
            resident = pl.BlockSpec
        in_specs = [
            x_spec,                                    # x tile (pipelined)
            resident(wx_ab.shape, lambda i: (0, 0)),   # resident fused [W1p|W2b]
            resident(b_ab.shape, lambda i: (0, 0)),    # resident fused [b1p|b2]
            resident(w2a.shape, lambda i: (0, 0)),     # resident W2a
            resident(w3b.shape, lambda i: (0, 0)),     # resident W3b
            resident(b3.shape, lambda i: (0, 0)),      # resident b3
            resident(w3a.shape, lambda i: (0, 0)),     # resident W3a
        ]
        return pl.pallas_call(
            kernel,
            out_shape=out_shape,
            grid=grid,
            in_specs=in_specs,
            out_specs=out_spec,
            compiler_params=cparams,
            cost_estimate=cost,
        )(x, wx_ab, b_ab, w2a, w3b, b3, w3a)

    try:
        out = run(True)
    except Exception:
        # Fallback if pipeline_mode=pl.Buffered(1) is unsupported by this jax version;
        # only costs one extra (tiny, constant-index) copy of the weight buffers.
        out = run(False)

    return out[:B]


def init_params(key, input_size, channel_n, kernel_size, hidden_size):
    """Deterministic init matching PyTorch nn.Linear default (U[-1/sqrt(fan_in), +])."""
    conv3d = channel_n * kernel_size * kernel_size
    fc0 = channel_n * 2 * hidden_size
    fc1 = hidden_size * channel_n
    output_size = conv3d + fc0 + fc1

    def linear(k, fan_in, fan_out):
        kw, kb = jax.random.split(k)
        bound = 1.0 / math.sqrt(fan_in)
        w = jax.random.uniform(kw, (fan_out, fan_in), jnp.float32, -bound, bound)
        b = jax.random.uniform(kb, (fan_out,), jnp.float32, -bound, bound)
        return w, b

    k1, k2, k3 = jax.random.split(key, 3)
    w1, b1 = linear(k1, input_size, 64)
    w2, b2 = linear(k2, 64 + input_size, 512)
    w3, b3 = linear(k3, 512 + input_size, output_size)
    return {
        "lin01_w": w1, "lin01_b": b1,
        "lin02_w": w2, "lin02_b": b2,
        "lin05_w": w3, "lin05_b": b3,
    }, output_size


def reference_forward(x, params):
    """Pure-JAX f32 reference mirroring the PyTorch module exactly."""
    dx = jnp.maximum(x @ params["lin01_w"].T + params["lin01_b"], 0.0)
    dx = jnp.concatenate((dx, x), axis=1)
    dx = jnp.maximum(dx @ params["lin02_w"].T + params["lin02_b"], 0.0)
    dx = jnp.concatenate((dx, x), axis=1)
    return dx @ params["lin05_w"].T + params["lin05_b"]


if __name__ == "__main__":
    # Small but representative config: output_size = 4*9 + 4*2*32 + 32*4 = 420.
    input_size, channel_n, kernel_size, hidden_size = 16, 4, 3, 32
    batch = 8

    key = jax.random.PRNGKey(0)
    kp, kx1, kx2, kx3 = jax.random.split(key, 4)
    params, output_size = init_params(kp, input_size, channel_n, kernel_size, hidden_size)
    prep = prepare_params(params)

    # Case 1: tiny batch (single tile).
    x = jax.random.normal(kx1, (batch, input_size), jnp.float32)
    out = jax.block_until_ready(hypernetwork_forward(x, prep))
    ref = reference_forward(x, params)
    assert out.shape == (batch, output_size), out.shape
    err = float(jnp.max(jnp.abs(out - ref)))
    assert jnp.allclose(out, ref, atol=2e-2, rtol=2e-2), err  # bf16 matmul, f32 accumulation

    # Case 2: batch not a multiple of the tile (exercises grid + batch padding).
    x2 = jax.random.normal(kx2, (200, input_size), jnp.float32)
    out2 = jax.block_until_ready(hypernetwork_forward(x2, prep, block_b=64))
    ref2 = reference_forward(x2, params)
    assert out2.shape == (200, output_size), out2.shape
    err2 = float(jnp.max(jnp.abs(out2 - ref2)))
    assert jnp.allclose(out2, ref2, atol=2e-2, rtol=2e-2), err2

    # Case 3: larger batch with default tiling (>=2 grid steps -> megacore path).
    x3 = jax.random.normal(kx3, (600, input_size), jnp.float32)
    out3 = jax.block_until_ready(hypernetwork_forward(x3, prep))
    ref3 = reference_forward(x3, params)
    assert out3.shape == (600, output_size), out3.shape
    err3 = float(jnp.max(jnp.abs(out3 - ref3)))
    assert jnp.allclose(out3, ref3, atol=2e-2, rtol=2e-2), err3

    print("KERNEL_OK")
</pallas_src>

<mosaic_0001>
module attributes {stable_mosaic.version = 11 : i64} {
  func.func @_hypernet_kernel(%arg0: i32, %arg1: memref<8x16xf32, #tpu.memory_space<vmem>>, %arg2: memref<16x640xbf16, #tpu.memory_space<vmem>>, %arg3: memref<1x640xf32, #tpu.memory_space<vmem>>, %arg4: memref<128x512xbf16, #tpu.memory_space<vmem>>, %arg5: memref<16x512xbf16, #tpu.memory_space<vmem>>, %arg6: memref<1x512xf32, #tpu.memory_space<vmem>>, %arg7: memref<512x512xbf16, #tpu.memory_space<vmem>>, %arg8: memref<8x420xf32, #tpu.memory_space<vmem>>) attributes {dimension_semantics = [#tpu.dimension_semantics<parallel>], iteration_bounds = array<i64: 1>, scalar_prefetch = 0 : i64, scratch_operands = 0 : i64, tpu.core_type = #tpu.core_type<tc>, window_params = [{transform_indices = @transform_0, window_bounds = array<i64: 8, 16>}, {pipeline_mode = #tpu.pipeline_mode<synchronous>, transform_indices = @transform_1, window_bounds = array<i64: 16, 640>}, {pipeline_mode = #tpu.pipeline_mode<synchronous>, transform_indices = @transform_2, window_bounds = array<i64: 1, 640>}, {pipeline_mode = #tpu.pipeline_mode<synchronous>, transform_indices = @transform_3, window_bounds = array<i64: 128, 512>}, {pipeline_mode = #tpu.pipeline_mode<synchronous>, transform_indices = @transform_4, window_bounds = array<i64: 16, 512>}, {pipeline_mode = #tpu.pipeline_mode<synchronous>, transform_indices = @transform_5, window_bounds = array<i64: 1, 512>}, {pipeline_mode = #tpu.pipeline_mode<synchronous>, transform_indices = @transform_6, window_bounds = array<i64: 512, 512>}, {transform_indices = @transform_7, window_bounds = array<i64: 8, 420>}]} {
    %c0 = arith.constant 0 : index
    %c0_0 = arith.constant 0 : index
    %0 = vector.load %arg1[%c0, %c0_0] : memref<8x16xf32, #tpu.memory_space<vmem>>, vector<8x16xf32>
    %1 = arith.truncf %0 : vector<8x16xf32> to vector<8x16xbf16>
    %c0_1 = arith.constant 0 : index
    %c0_2 = arith.constant 0 : index
    %2 = vector.load %arg2[%c0_1, %c0_2] : memref<16x640xbf16, #tpu.memory_space<vmem>>, vector<16x640xbf16>
    %cst = arith.constant dense<0.000000e+00> : vector<8x640xf32>
    %3 = tpu.matmul %1, %2, %cst {dimension_numbers = #tpu.dot_dimension_numbers<[1], [0], [0], [1], [0, 0, 1, 1], [], []>} : vector<8x16xbf16>, vector<16x640xbf16>, vector<8x640xf32> -> vector<8x640xf32>
    %c0_3 = arith.constant 0 : index
    %c0_4 = arith.constant 0 : index
    %4 = vector.load %arg3[%c0_3, %c0_4] : memref<1x640xf32, #tpu.memory_space<vmem>>, vector<1x640xf32>
    %5 = vector.broadcast %4 : vector<1x640xf32> to vector<8x640xf32>
    %6 = arith.addf %3, %5 : vector<8x640xf32>
    %7 = vector.extract_strided_slice %6 {offsets = [0, 0], sizes = [8, 128], strides = [1, 1]} : vector<8x640xf32> to vector<8x128xf32>
    %cst_5 = arith.constant 0.000000e+00 : f32
    %8 = vector.broadcast %cst_5 : f32 to vector<8x128xf32>
    %9 = arith.maximumf %7, %8 : vector<8x128xf32>
    %10 = arith.truncf %9 : vector<8x128xf32> to vector<8x128xbf16>
    %c0_6 = arith.constant 0 : index
    %c0_7 = arith.constant 0 : index
    %11 = vector.load %arg4[%c0_6, %c0_7] : memref<128x512xbf16, #tpu.memory_space<vmem>>, vector<128x512xbf16>
    %cst_8 = arith.constant dense<0.000000e+00> : vector<8x512xf32>
    %12 = tpu.matmul %10, %11, %cst_8 {dimension_numbers = #tpu.dot_dimension_numbers<[1], [0], [0], [1], [0, 0, 1, 1], [], []>} : vector<8x128xbf16>, vector<128x512xbf16>, vector<8x512xf32> -> vector<8x512xf32>
    %13 = vector.extract_strided_slice %6 {offsets = [0, 128], sizes = [8, 512], strides = [1, 1]} : vector<8x640xf32> to vector<8x512xf32>
    %14 = arith.addf %12, %13 : vector<8x512xf32>
    %cst_9 = arith.constant 0.000000e+00 : f32
    %15 = vector.broadcast %cst_9 : f32 to vector<8x512xf32>
    %16 = arith.maximumf %14, %15 : vector<8x512xf32>
    %17 = arith.truncf %16 : vector<8x512xf32> to vector<8x512xbf16>
    %c0_10 = arith.constant 0 : index
    %c0_11 = arith.constant 0 : index
    %18 = vector.load %arg5[%c0_10, %c0_11] : memref<16x512xbf16, #tpu.memory_space<vmem>>, vector<16x512xbf16>
    %cst_12 = arith.constant dense<0.000000e+00> : vector<8x512xf32>
    %19 = tpu.matmul %1, %18, %cst_12 {dimension_numbers = #tpu.dot_dimension_numbers<[1], [0], [0], [1], [0, 0, 1, 1], [], []>} : vector<8x16xbf16>, vector<16x512xbf16>, vector<8x512xf32> -> vector<8x512xf32>
    %c0_13 = arith.constant 0 : index
    %c0_14 = arith.constant 0 : index
    %20 = vector.load %arg6[%c0_13, %c0_14] : memref<1x512xf32, #tpu.memory_space<vmem>>, vector<1x512xf32>
    %21 = vector.broadcast %20 : vector<1x512xf32> to vector<8x512xf32>
    %22 = arith.addf %19, %21 : vector<8x512xf32>
    %c0_15 = arith.constant 0 : index
    %c0_16 = arith.constant 0 : index
    %23 = vector.load %arg7[%c0_15, %c0_16] : memref<512x512xbf16, #tpu.memory_space<vmem>>, vector<512x512xbf16>
    %cst_17 = arith.constant dense<0.000000e+00> : vector<8x512xf32>
    %24 = tpu.matmul %17, %23, %cst_17 {dimension_numbers = #tpu.dot_dimension_numbers<[1], [0], [0], [1], [0, 0, 1, 1], [], []>} : vector<8x512xbf16>, vector<512x512xbf16>, vector<8x512xf32> -> vector<8x512xf32>
    %25 = arith.addf %24, %22 : vector<8x512xf32>
    %26 = vector.extract_strided_slice %25 {offsets = [0, 0], sizes = [8, 420], strides = [1, 1]} : vector<8x512xf32> to vector<8x420xf32>
    %c0_18 = arith.constant 0 : index
    %c0_19 = arith.constant 0 : index
    %27 = vector.load %arg8[%c0_18, %c0_19] : memref<8x420xf32, #tpu.memory_space<vmem>>, vector<8x420xf32>
    tpu.vector_store %arg8[%c0_18, %c0_19], %26 {strides = array<i32>} : memref<8x420xf32, #tpu.memory_space<vmem>>, vector<8x420xf32>,
    return
  }
  func.func @transform_0(%arg0: i32) -> (i32, i32) {
    %c0_i32 = arith.constant 0 : i32
    %c0_i32_0 = arith.constant 0 : i32
    return %arg0, %c0_i32 : i32, i32
  }
  func.func @transform_1(%arg0: i32) -> (i32, i32) {
    %c0_i32 = arith.constant 0 : i32
    %c0_i32_0 = arith.constant 0 : i32
    %c0_i32_1 = arith.constant 0 : i32
    return %c0_i32, %c0_i32_0 : i32, i32
  }
  func.func @transform_2(%arg0: i32) -> (i32, i32) {
    %c0_i32 = arith.constant 0 : i32
    %c0_i32_0 = arith.constant 0 : i32
    %c0_i32_1 = arith.constant 0 : i32
    return %c0_i32, %c0_i32_0 : i32, i32
  }
  func.func @transform_3(%arg0: i32) -> (i32, i32) {
    %c0_i32 = arith.constant 0 : i32
    %c0_i32_0 = arith.constant 0 : i32
    %c0_i32_1 = arith.constant 0 : i32
    return %c0_i32, %c0_i32_0 : i32, i32
  }
  func.func @transform_4(%arg0: i32) -> (i32, i32) {
    %c0_i32 = arith.constant 0 : i32
    %c0_i32_0 = arith.constant 0 : i32
    %c0_i32_1 = arith.constant 0 : i32
    return %c0_i32, %c0_i32_0 : i32, i32
  }
  func.func @transform_5(%arg0: i32) -> (i32, i32) {
    %c0_i32 = arith.constant 0 : i32
    %c0_i32_0 = arith.constant 0 : i32
    %c0_i32_1 = arith.constant 0 : i32
    return %c0_i32, %c0_i32_0 : i32, i32
  }
  func.func @transform_6(%arg0: i32) -> (i32, i32) {
    %c0_i32 = arith.constant 0 : i32
    %c0_i32_0 = arith.constant 0 : i32
    %c0_i32_1 = arith.constant 0 : i32
    return %c0_i32, %c0_i32_0 : i32, i32
  }
  func.func @transform_7(%arg0: i32) -> (i32, i32) {
    %c0_i32 = arith.constant 0 : i32
    %c0_i32_0 = arith.constant 0 : i32
    return %arg0, %c0_i32 : i32, i32
  }
}

module attributes {stable_mosaic.version = 11 : i64} {
  func.func @_hypernet_kernel(%arg0: i32, %arg1: memref<8x16xf32, #tpu.memory_space<vmem>>, %arg2: memref<16x640xbf16, #tpu.memory_space<vmem>>, %arg3: memref<1x640xf32, #tpu.memory_space<vmem>>, %arg4: memref<128x512xbf16, #tpu.memory_space<vmem>>, %arg5: memref<16x512xbf16, #tpu.memory_space<vmem>>, %arg6: memref<1x512xf32, #tpu.memory_space<vmem>>, %arg7: memref<512x512xbf16, #tpu.memory_space<vmem>>, %arg8: memref<8x420xf32, #tpu.memory_space<vmem>>) attributes {dimension_semantics = [#tpu.dimension_semantics<parallel>], iteration_bounds = array<i64: 1>, scalar_prefetch = 0 : i64, scratch_operands = 0 : i64, tpu.core_type = #tpu.core_type<tc>, window_params = [{transform_indices = @transform_0, window_bounds = array<i64: 8, 16>}, {pipeline_mode = #tpu.pipeline_mode<synchronous>, transform_indices = @transform_1, window_bounds = array<i64: 16, 640>}, {pipeline_mode = #tpu.pipeline_mode<synchronous>, transform_indices = @transform_2, window_bounds = array<i64: 1, 640>}, {pipeline_mode = #tpu.pipeline_mode<synchronous>, transform_indices = @transform_3, window_bounds = array<i64: 128, 512>}, {pipeline_mode = #tpu.pipeline_mode<synchronous>, transform_indices = @transform_4, window_bounds = array<i64: 16, 512>}, {pipeline_mode = #tpu.pipeline_mode<synchronous>, transform_indices = @transform_5, window_bounds = array<i64: 1, 512>}, {pipeline_mode = #tpu.pipeline_mode<synchronous>, transform_indices = @transform_6, window_bounds = array<i64: 512, 512>}, {transform_indices = @transform_7, window_bounds = array<i64: 8, 420>}]} {
    %c0 = arith.constant 0 : index
    %c0_0 = arith.constant 0 : index
    %0 = vector.load %arg1[%c0, %c0_0] : memref<8x16xf32, #tpu.memory_space<vmem>>, vector<8x16xf32>
    %1 = arith.truncf %0 : vector<8x16xf32> to vector<8x16xbf16>
    %c0_1 = arith.constant 0 : index
    %c0_2 = arith.constant 0 : index
    %2 = vector.load %arg2[%c0_1, %c0_2] : memref<16x640xbf16, #tpu.memory_space<vmem>>, vector<16x640xbf16>
    %cst = arith.constant dense<0.000000e+00> : vector<8x640xf32>
    %3 = tpu.matmul %1, %2, %cst {dimension_numbers = #tpu.dot_dimension_numbers<[1], [0], [0], [1], [0, 0, 1, 1], [], []>} : vector<8x16xbf16>, vector<16x640xbf16>, vector<8x640xf32> -> vector<8x640xf32>
    %c0_3 = arith.constant 0 : index
    %c0_4 = arith.constant 0 : index
    %4 = vector.load %arg3[%c0_3, %c0_4] : memref<1x640xf32, #tpu.memory_space<vmem>>, vector<1x640xf32>
    %5 = vector.broadcast %4 : vector<1x640xf32> to vector<8x640xf32>
    %6 = arith.addf %3, %5 : vector<8x640xf32>
    %7 = vector.extract_strided_slice %6 {offsets = [0, 0], sizes = [8, 128], strides = [1, 1]} : vector<8x640xf32> to vector<8x128xf32>
    %cst_5 = arith.constant 0.000000e+00 : f32
    %8 = vector.broadcast %cst_5 : f32 to vector<8x128xf32>
    %9 = arith.maximumf %7, %8 : vector<8x128xf32>
    %10 = arith.truncf %9 : vector<8x128xf32> to vector<8x128xbf16>
    %c0_6 = arith.constant 0 : index
    %c0_7 = arith.constant 0 : index
    %11 = vector.load %arg4[%c0_6, %c0_7] : memref<128x512xbf16, #tpu.memory_space<vmem>>, vector<128x512xbf16>
    %cst_8 = arith.constant dense<0.000000e+00> : vector<8x512xf32>
    %12 = tpu.matmul %10, %11, %cst_8 {dimension_numbers = #tpu.dot_dimension_numbers<[1], [0], [0], [1], [0, 0, 1, 1], [], []>} : vector<8x128xbf16>, vector<128x512xbf16>, vector<8x512xf32> -> vector<8x512xf32>
    %13 = vector.extract_strided_slice %6 {offsets = [0, 128], sizes = [8, 512], strides = [1, 1]} : vector<8x640xf32> to vector<8x512xf32>
    %14 = arith.addf %12, %13 : vector<8x512xf32>
    %cst_9 = arith.constant 0.000000e+00 : f32
    %15 = vector.broadcast %cst_9 : f32 to vector<8x512xf32>
    %16 = arith.maximumf %14, %15 : vector<8x512xf32>
    %17 = arith.truncf %16 : vector<8x512xf32> to vector<8x512xbf16>
    %c0_10 = arith.constant 0 : index
    %c0_11 = arith.constant 0 : index
    %18 = vector.load %arg5[%c0_10, %c0_11] : memref<16x512xbf16, #tpu.memory_space<vmem>>, vector<16x512xbf16>
    %cst_12 = arith.constant dense<0.000000e+00> : vector<8x512xf32>
    %19 = tpu.matmul %1, %18, %cst_12 {dimension_numbers = #tpu.dot_dimension_numbers<[1], [0], [0], [1], [0, 0, 1, 1], [], []>} : vector<8x16xbf16>, vector<16x512xbf16>, vector<8x512xf32> -> vector<8x512xf32>
    %c0_13 = arith.constant 0 : index
    %c0_14 = arith.constant 0 : index
    %20 = vector.load %arg6[%c0_13, %c0_14] : memref<1x512xf32, #tpu.memory_space<vmem>>, vector<1x512xf32>
    %21 = vector.broadcast %20 : vector<1x512xf32> to vector<8x512xf32>
    %22 = arith.addf %19, %21 : vector<8x512xf32>
    %c0_15 = arith.constant 0 : index
    %c0_16 = arith.constant 0 : index
    %23 = vector.load %arg7[%c0_15, %c0_16] : memref<512x512xbf16, #tpu.memory_space<vmem>>, vector<512x512xbf16>
    %cst_17 = arith.constant dense<0.000000e+00> : vector<8x512xf32>
    %24 = tpu.matmul %17, %23, %cst_17 {dimension_numbers = #tpu.dot_dimension_numbers<[1], [0], [0], [1], [0, 0, 1, 1], [], []>} : vector<8x512xbf16>, vector<512x512xbf16>, vector<8x512xf32> -> vector<8x512xf32>
    %25 = arith.addf %24, %22 : vector<8x512xf32>
    %26 = vector.extract_strided_slice %25 {offsets = [0, 0], sizes = [8, 420], strides = [1, 1]} : vector<8x512xf32> to vector<8x420xf32>
    %c0_18 = arith.constant 0 : index
    %c0_19 = arith.constant 0 : index
    %27 = vector.load %arg8[%c0_18, %c0_19] : memref<8x420xf32, #tpu.memory_space<vmem>>, vector<8x420xf32>
    tpu.vector_store %arg8[%c0_18, %c0_19], %26 {strides = array<i32>} : memref<8x420xf32, #tpu.memory_space<vmem>>, vector<8x420xf32>,
    return
  }
  func.func @transform_0(%arg0: i32) -> (i32, i32) {
    %c0_i32 = arith.constant 0 : i32
    %c0_i32_0 = arith.constant 0 : i32
    return %arg0, %c0_i32 : i32, i32
  }
  func.func @transform_1(%arg0: i32) -> (i32, i32) {
    %c0_i32 = arith.constant 0 : i32
    %c0_i32_0 = arith.constant 0 : i32
    %c0_i32_1 = arith.constant 0 : i32
    return %c0_i32, %c0_i32_0 : i32, i32
  }
  func.func @transform_2(%arg0: i32) -> (i32, i32) {
    %c0_i32 = arith.constant 0 : i32
    %c0_i32_0 = arith.constant 0 : i32
    %c0_i32_1 = arith.constant 0 : i32
    return %c0_i32, %c0_i32_0 : i32, i32
  }
  func.func @transform_3(%arg0: i32) -> (i32, i32) {
    %c0_i32 = arith.constant 0 : i32
    %c0_i32_0 = arith.constant 0 : i32
    %c0_i32_1 = arith.constant 0 : i32
    return %c0_i32, %c0_i32_0 : i32, i32
  }
  func.func @transform_4(%arg0: i32) -> (i32, i32) {
    %c0_i32 = arith.constant 0 : i32
    %c0_i32_0 = arith.constant 0 : i32
    %c0_i32_1 = arith.constant 0 : i32
    return %c0_i32, %c0_i32_0 : i32, i32
  }
  func.func @transform_5(%arg0: i32) -> (i32, i32) {
    %c0_i32 = arith.constant 0 : i32
    %c0_i32_0 = arith.constant 0 : i32
    %c0_i32_1 = arith.constant 0 : i32
    return %c0_i32, %c0_i32_0 : i32, i32
  }
  func.func @transform_6(%arg0: i32) -> (i32, i32) {
    %c0_i32 = arith.constant 0 : i32
    %c0_i32_0 = arith.constant 0 : i32
    %c0_i32_1 = arith.constant 0 : i32
    return %c0_i32, %c0_i32_0 : i32, i32
  }
  func.func @transform_7(%arg0: i32) -> (i32, i32) {
    %c0_i32 = arith.constant 0 : i32
    %c0_i32_0 = arith.constant 0 : i32
    return %arg0, %c0_i32 : i32, i32
  }
}

</mosaic_0001>

<bundles_post_ra>
// kernel: tpu_custom_call.1
= control target key start
LH: loop header
LB: loop body
LE: loop exit
PB: predicated region body
PF: predicated region fallthrough
CT: control target
= control target key end

     0   :  { %12 = vsyncpa [#allocation3], 0  ;;  %s2424_s0 = inlined_call_operand.hbm [shape: f32[8,16], index: 0, kind: input, shape index: {}]   ;;  %s2425_s1 = inlined_call_operand.hbm [shape: bf16[16,640], index: 1, kind: input, shape index: {}]   ;;  %s2426_s2 = inlined_call_operand.hbm [shape: f32[1,640], index: 2, kind: input, shape index: {}]   ;;  %s2427_s3 = inlined_call_operand.hbm [shape: bf16[128,512], index: 3, kind: input, shape index: {}]   ;;  %s2428_s4 = inlined_call_operand.hbm [shape: bf16[16,512], index: 4, kind: input, shape index: {}]   ;;  %s2429_s5 = inlined_call_operand.vmem [shape: f32[1,512], index: 5, kind: input, shape index: {}]   ;;  %s2430_s6 = inlined_call_operand.hbm [shape: bf16[512,512], index: 6, kind: input, shape index: {}]   ;;  %s2431_s7 = inlined_call_operand.hbm [shape: f32[8,420], index: 7, kind: output, shape index: {}]  }
   0x1   :  { %13 = vsyncpa [#allocation6], 0 }
   0x2   :  { %14 = vsyncpa [#allocation9], 0 }
   0x3   :  { %15 = vsyncpa [#allocation12], 0 }
   0x4   :  { %16 = vsyncpa [#allocation4], 0  ;;  %s2259_s24 = smov [#allocation5]  }
   0x5   :  { %s32_s25 = sshll.u32 %s2259_s24, 4  ;;  %s33_s25 = int_to_ptr.vmem [resolvable:$true] %s32_s25 }
   0x6   :  { %s2117_s26 = scalar_lea.vmem %s33_s25, 640  ;;  %p2122_p1 = scmp.lt.s32.totalorder %s33_s25, %s33_s25 }
   0x7   :  { %p2118_p0 = scmp.ne.s32.totalorder %s33_s25, %s2117_s26  ;;  %p2123_p2 = scmp.lt.s32.totalorder %s2117_s26, %s2117_s26 }
   0x9   :  { %p2124_p3 = por %p2123_p2, %p2122_p1 }
   0xb   :  { %p2125_p4 = pnand %p2124_p3, %p2118_p0 }
   0xd   :  { %2128 = shalt.err (!%p2125_p4)
}
   0xe   :  { %s2260_s27 = smov 320   ;;  %s2261_s28 = smov 20  }
   0xf   :  { %38 = dma.hbm_to_vmem [thread:$0]  %s2425_s1, 640, %s33_s25, [#allocation6], %s2260_s27, %s2260_s27, %s2261_s28  }
  0x10   :  { %s2262_s8 = smov [#allocation8]  }
  0x11   :  { %s54_s9 = sshll.u32 %s2262_s8, 4  ;;  %s55_s9 = int_to_ptr.vmem [resolvable:$true] %s54_s9 }
  0x12   :  { %s2137_s10 = scalar_lea.vmem %s55_s9, 4096  ;;  %p2142_p6 = scmp.lt.s32.totalorder %s55_s9, %s55_s9 }
  0x13   :  { %p2138_p5 = scmp.ne.s32.totalorder %s55_s9, %s2137_s10  ;;  %p2143_p7 = scmp.lt.s32.totalorder %s2137_s10, %s2137_s10 }
  0x15   :  { %p2144_p8 = por %p2143_p7, %p2142_p6 }
  0x17   :  { %p2145_p9 = pnand %p2144_p8, %p2138_p5 }
  0x19   :  { %2148 = shalt.err (!%p2145_p9)
}
  0x1a   :  { %s2263_s11 = smov 256   ;;  %s2264_s12 = smov 16  }
  0x1b   :  { %60 = dma.hbm_to_vmem [thread:$0]  %s2427_s3, 4096, %s55_s9, [#allocation9], %s2263_s11, %s2263_s11, %s2264_s12  }
  0x1c   :  { %s2265_s1 = smov [#allocation2]   ;;  %s2266_s16 = smov [#allocation7]  }
  0x1d   :  { %s23_s15 = sshll.u32 %s2265_s1, 4  ;;  %s45_s17 = sshll.u32 %s2266_s16, 4  ;;  %s24_s15 = int_to_ptr.vmem [resolvable:$true] %s23_s15  ;;  %s46_s17 = int_to_ptr.vmem [resolvable:$true] %s45_s17 }
  0x1e   :  { %s2157_s18 = scalar_lea.vmem %s24_s15, 128  ;;  %p2162_p11 = scmp.lt.s32.totalorder %s24_s15, %s24_s15 }
  0x1f   :  { %p2158_p10 = scmp.ne.s32.totalorder %s24_s15, %s2157_s18  ;;  %p2163_p12 = scmp.lt.s32.totalorder %s2157_s18, %s2157_s18 }
  0x21   :  { %p2164_p13 = por %p2163_p12, %p2162_p11 }
  0x23   :  { %p2165_p0 = pnand %p2164_p13, %p2158_p10 }
  0x25   :  { %2168 = shalt.err (!%p2165_p0)
}
  0x26   :  { %26 = dma.hbm_to_vmem [thread:$0]  %s2424_s0, 128, %s24_s15, [#allocation3]  }
  0x27   :  { %s2177_s21 = scalar_lea.vmem %s46_s17, 80  ;;  %s2181_s3 = scalar_lea.vmem %s46_s17, 96 }
  0x28   :  { %p2178_p1 = scmp.ne.s32.totalorder %s46_s17, %s2177_s21  ;;  %p2182_p2 = scmp.lt.s32.totalorder %s46_s17, %s46_s17 }
  0x29   :  { %p2183_p3 = scmp.lt.s32.totalorder %s2181_s3, %s2177_s21 }
  0x2b   :  { %p2184_p4 = por %p2183_p3, %p2182_p2 }
  0x2d   :  { %p2185_p5 = pnand %p2184_p4, %p2178_p1 }
  0x2f   :  { %2188 = shalt.err (!%p2185_p5)
}
  0x30   :  { %48 = dma.hbm_to_vmem [thread:$0]  %s2426_s2, 80, %s46_s17, [#allocation6]  }
  0x31   :  { %s2267_s24 = smov [#allocation10]   ;;  %s2268_s26 = smov [#allocation11]  }
  0x32   :  { %s66_s25 = sshll.u32 %s2267_s24, 4  ;;  %s80_s27 = sshll.u32 %s2268_s26, 4  ;;  %s67_s25 = int_to_ptr.vmem [resolvable:$true] %s66_s25  ;;  %s81_s27 = int_to_ptr.vmem [resolvable:$true] %s80_s27 }
  0x33   :  { %s2197_s28 = scalar_lea.vmem %s67_s25, 512  ;;  %p2202_p7 = scmp.lt.s32.totalorder %s67_s25, %s67_s25 }
  0x34   :  { %p2198_p6 = scmp.ne.s32.totalorder %s67_s25, %s2197_s28  ;;  %p2203_p8 = scmp.lt.s32.totalorder %s2197_s28, %s2197_s28 }
  0x36   :  { %p2204_p9 = por %p2203_p8, %p2202_p7 }
  0x38   :  { %p2205_p10 = pnand %p2204_p9, %p2198_p6 }
  0x3a   :  { %2208 = shalt.err (!%p2205_p10)
}
  0x3b   :  { %72 = dma.hbm_to_vmem [thread:$0]  %s2428_s4, 512, %s67_s25, [#allocation9], %s2263_s11, %s2263_s11, %s2264_s12  }
  0x3c   :  { %s2217_s2 = scalar_lea.vmem %s81_s27, 16384  ;;  %p2222_p12 = scmp.lt.s32.totalorder %s81_s27, %s81_s27 }
  0x3d   :  { %p2218_p11 = scmp.ne.s32.totalorder %s81_s27, %s2217_s2  ;;  %p2223_p13 = scmp.lt.s32.totalorder %s2217_s2, %s2217_s2 }
  0x3f   :  { %p2224_p0 = por %p2223_p13, %p2222_p12 }
  0x41   :  { %p2225_p1 = pnand %p2224_p0, %p2218_p11 }
  0x43   :  { %2228 = shalt.err (!%p2225_p1)
}
  0x44   :  { %86 = dma.hbm_to_vmem [thread:$0]  %s2430_s6, 16384, %s81_s27, [#allocation12], %s2263_s11, %s2263_s11, %s2264_s12  }
  0x45   :  { %2249 = dma.done.wait [#allocation3], 128  }
  0x46   :  { %2250 = vsyncadd [#allocation3], 4294967168 }
  0x47   :  { %2251 = dma.done.wait [#allocation6], 720  }
  0x48   :  { %2252 = vsyncadd [#allocation6], 4294966576 }
  0x49   :  { %2253 = dma.done.wait [#allocation9], 4608  }
  0x4a   :  { %2254 = vsyncadd [#allocation9], 4294962688 }
  0x4b   :  { %2255 = dma.done.wait [#allocation12], 16384  }
  0x4c   :  { %2256 = vsyncadd [#allocation12], 4294950912  ;;  %v2269_v0 = vmov 0   ;;  %v1856_v1 = vld [vmem:[#allocation5 + $0x4] ss:$20 sps:$4 sm:$0xff]   ;;  %vm167_vm0 = vcmask 130048   ;;  %v116_v43 = vlaneseq }
  0x4d   :  { %203 = vmatprep.mubr.bf16.mxu0 %v2269_v0  ;;  %244 = vmatprep.mubr.bf16.mxu1 %v2269_v0  ;;  %v1858_v2 = vld [vmem:[#allocation5] ss:$20 sps:$4 sm:$0xff]   ;;  %v106_v3 = vld [vmem:[#allocation2] sm:$0xff]  ;;  %v1862_v7 = vld [vmem:[#allocation5 + $0x10] ss:$20 sps:$4 sm:$0xff]   ;;  %v2270_v8 = vmov 0.0  }
  0x4e   :  { %185 = vmatprep.subr.bf16.mxu0 %v1856_v1  ;;  %v2342_v4 = vpack.c.bf16 %v106_v3, %v106_v3  ;;  %v1859_v5 = vld [vmem:[#allocation5 + $0xc] ss:$20 sps:$4 sm:$0xff]   ;;  %v1861_v6 = vld [vmem:[#allocation5 + $0x8] ss:$20 sps:$4 sm:$0xff]   ;;  %vm2271_vm1 = vmmov 0   ;;  %v2352_v44 = vshrl.u32 %v116_v43, 7 }
  0x4f   :  { %186 = vmatpush1.bf16.msra.mxu0 %v1858_v2  ;;  %226 = vmatprep.subr.bf16.mxu1 %v1859_v5  ;;  %v1863_v9 = vld [vmem:[#allocation8 + $0xe0] ss:$16 sps:$4 sm:$0xff]   ;;  %v1865_v10 = vld [vmem:[#allocation8 + $0xe4] ss:$16 sps:$4 sm:$0xff]   ;;  %v1868_v11 = vld [vmem:[#allocation8 + $0xec] ss:$16 sps:$4 sm:$0xff]  }
  0x50   :  { %1836 = vmatprep.subr.bf16.mxu0 %v2270_v8  ;;  %227 = vmatpush1.bf16.msra.mxu1 %v1861_v6  ;;  %v1871_v12 = vld [vmem:[#allocation8 + $0xc4] ss:$16 sps:$4 sm:$0xff]   ;;  %v1869_v13 = vld [vmem:[#allocation8 + $0xc0] ss:$16 sps:$4 sm:$0xff]   ;;  %v1866_v15 = vld [vmem:[#allocation8 + $0xe8] ss:$16 sps:$4 sm:$0xff]  }
  0x51   :  { %487 = vmatprep.subr.bf16.mxu1 %v1865_v10  ;;  %v1877_v14 = vld [vmem:[#allocation8 + $0xa4] ss:$16 sps:$4 sm:$0xff]   ;;  %v1874_v16 = vld [vmem:[#allocation8 + $0xcc] ss:$16 sps:$4 sm:$0xff]   ;;  %v1875_v17 = vld [vmem:[#allocation8 + $0xa0] ss:$16 sps:$4 sm:$0xff]  }
  0x52   :  { %1665 = vmatmul.mubr.msk.bf16.vlgmr.msra.gmra.mxu0 %vm167_vm0, %v2342_v4  ;;  %v1883_v18 = vld [vmem:[#allocation8 + $0x84] ss:$16 sps:$4 sm:$0xff]   ;;  %v1872_v19 = vld [vmem:[#allocation8 + $0xc8] ss:$16 sps:$4 sm:$0xff]   ;;  %v1880_v20 = vld [vmem:[#allocation8 + $0xac] ss:$16 sps:$4 sm:$0xff]  }
  0x53   :  { %1837 = vmatpush3.bf16.msra.mxu0 %v1862_v7  ;;  %1838 = vmatprep.mubr.msk.bf16.mxu0 %vm2271_vm1, %v2270_v8  ;;  %v1881_v21 = vld [vmem:[#allocation8 + $0x80] ss:$16 sps:$4 sm:$0xff]   ;;  %v1889_v22 = vld [vmem:[#allocation8 + $0x64] ss:$16 sps:$4 sm:$0xff]   ;;  %v1878_v23 = vld [vmem:[#allocation8 + $0xa8] ss:$16 sps:$4 sm:$0xff]  }
  0x54   :  { %1666 = vmatmul.mubr.msk.bf16.vlgmr.msra.gmra.mxu1 %vm167_vm0, %v2342_v4  ;;  %528 = vmatprep.subr.bf16.mxu0 %v1868_v11  ;;  %v1886_v24 = vld [vmem:[#allocation8 + $0x8c] ss:$16 sps:$4 sm:$0xff]   ;;  %v1887_v25 = vld [vmem:[#allocation8 + $0x60] ss:$16 sps:$4 sm:$0xff]   ;;  %v1884_v26 = vld [vmem:[#allocation8 + $0x88] ss:$16 sps:$4 sm:$0xff]  }
  0x55   :  { %488 = vmatpush1.bf16.msra.mxu1 %v1863_v9  ;;  %519 = vmatprep.mubr.bf16.mxu1 %v2269_v0  ;;  %v1892_v27 = vld [vmem:[#allocation8 + $0x6c] ss:$16 sps:$4 sm:$0xff]   ;;  %v1895_v28 = vld [vmem:[#allocation8 + $0x44] ss:$16 sps:$4 sm:$0xff]   ;;  %v1893_v29 = vld [vmem:[#allocation8 + $0x40] ss:$16 sps:$4 sm:$0xff]  }
  0x56   :  { %489 = vmatprep.subr.bf16.mxu1 %v1871_v12  ;;  %v1901_v30 = vld [vmem:[#allocation8 + $0x24] ss:$16 sps:$4 sm:$0xff]   ;;  %v1890_v31 = vld [vmem:[#allocation8 + $0x68] ss:$16 sps:$4 sm:$0xff]   ;;  %v1898_v32 = vld [vmem:[#allocation8 + $0x4c] ss:$16 sps:$4 sm:$0xff]  }
  0x57   :  { %v1899_v33 = vld [vmem:[#allocation8 + $0x20] ss:$16 sps:$4 sm:$0xff]   ;;  %v1896_v34 = vld [vmem:[#allocation8 + $0x48] ss:$16 sps:$4 sm:$0xff]   ;;  %v1904_v35 = vld [vmem:[#allocation8 + $0x2c] ss:$16 sps:$4 sm:$0xff]  }
  0x58   :  { %v1902_v36 = vld [vmem:[#allocation8 + $0x28] ss:$16 sps:$4 sm:$0xff]   ;;  %v1907_v37 = vld [vmem:[#allocation8 + $0x4] ss:$16 sps:$4 sm:$0xff]   ;;  %v1910_v38 = vld [vmem:[#allocation8 + $0xc] ss:$16 sps:$4 sm:$0xff]  }
  0x59   :  { %490 = vmatpush1.bf16.msra.mxu1 %v1869_v13  ;;  %v1905_v39 = vld [vmem:[#allocation8] ss:$16 sps:$4 sm:$0xff]   ;;  %v1908_v40 = vld [vmem:[#allocation8 + $0x8] ss:$16 sps:$4 sm:$0xff]   ;;  %v1913_v41 = vld [vmem:[#allocation10 + $0x4] ss:$16 sps:$4 sm:$0xff]  }
  0x5a   :  { %1839 = vmatmul.mubr.msk.bf16.vlgmr.msra.gmra.mxu0 %vm167_vm0, %v2342_v4  ;;  %491 = vmatprep.subr.bf16.mxu1 %v1877_v14  ;;  %v1916_v42 = vld [vmem:[#allocation10 + $0xc] ss:$16 sps:$4 sm:$0xff]   ;;  %v118_v45 = vsub.s32 0, %v2352_v44  ;;  %v1911_v54 = vld [vmem:[#allocation10] ss:$16 sps:$4 sm:$0xff]   ;;  %vm1640_vm2 = vcmask 293888  }
  0x5b   :  { %529 = vmatpush1.bf16.msra.mxu0 %v1866_v15  ;;  %560 = vmatprep.mubr.bf16.mxu0 %v2269_v0  ;;  %v2355_v46 = vld [vmem:[#allocation7] sm:$0x1f]  ;;  %v1919_v59 = vld [vmem:[#allocation11 + $0xe4] ss:$16 sps:$4 sm:$0xff]   ;;  %v1917_v2 = vld [vmem:[#allocation11 + $0xe0] ss:$16 sps:$4 sm:$0xff]  }
  0x5c   :  { %530 = vmatprep.subr.bf16.mxu0 %v1874_v16  ;;  %v119_v47 = vrot.slane %v2355_v46, %v118_v45  ;;  %v1914_v57 = vld [vmem:[#allocation10 + $0x8] ss:$16 sps:$4 sm:$0xff]   ;;  %v1922_v60 = vld [vmem:[#allocation11 + $0x2e4] ss:$16 sps:$4 sm:$0xff]   ;;  %v1920_v3 = vld [vmem:[#allocation11 + $0x2e0] ss:$16 sps:$4 sm:$0xff]  }
  0x5d   :  { %492 = vmatpush1.bf16.msra.mxu1 %v1875_v17  ;;  %v1925_v6 = vld [vmem:[#allocation11 + $0xc4] ss:$16 sps:$4 sm:$0xff]   ;;  %v1923_v9 = vld [vmem:[#allocation11 + $0xc0] ss:$16 sps:$4 sm:$0xff]  }
  0x5e   :  { %493 = vmatprep.subr.bf16.mxu1 %v1883_v18  ;;  %v1928_v7 = vld [vmem:[#allocation11 + $0x2c4] ss:$16 sps:$4 sm:$0xff]   ;;  %v1926_v10 = vld [vmem:[#allocation11 + $0x2c0] ss:$16 sps:$4 sm:$0xff]  }
  0x5f   :  { %531 = vmatpush1.bf16.msra.mxu0 %v1872_v19  ;;  %v1934_v11 = vld [vmem:[#allocation11 + $0x2a4] ss:$16 sps:$4 sm:$0xff]   ;;  %v1929_v12 = vld [vmem:[#allocation11 + $0xa0] ss:$16 sps:$4 sm:$0xff]  }
  0x60   :  { %532 = vmatprep.subr.bf16.mxu0 %v1880_v20  ;;  %v1932_v13 = vld [vmem:[#allocation11 + $0x2a0] ss:$16 sps:$4 sm:$0xff]   ;;  %v1937_v14 = vld [vmem:[#allocation11 + $0x84] ss:$16 sps:$4 sm:$0xff]  }
  0x61   :  { %494 = vmatpush1.bf16.msra.mxu1 %v1881_v21  ;;  %v1940_v15 = vld [vmem:[#allocation11 + $0x284] ss:$16 sps:$4 sm:$0xff]   ;;  %v1935_v16 = vld [vmem:[#allocation11 + $0x80] ss:$16 sps:$4 sm:$0xff]  }
  0x62   :  { %495 = vmatprep.subr.bf16.mxu1 %v1889_v22  ;;  %v1943_v17 = vld [vmem:[#allocation11 + $0x64] ss:$16 sps:$4 sm:$0xff]   ;;  %v1941_v19 = vld [vmem:[#allocation11 + $0x60] ss:$16 sps:$4 sm:$0xff]  }
  0x63   :  { %533 = vmatpush1.bf16.msra.mxu0 %v1878_v23  ;;  %v1946_v18 = vld [vmem:[#allocation11 + $0x264] ss:$16 sps:$4 sm:$0xff]   ;;  %v1944_v20 = vld [vmem:[#allocation11 + $0x260] ss:$16 sps:$4 sm:$0xff]  }
  0x64   :  { %534 = vmatprep.subr.bf16.mxu0 %v1886_v24  ;;  %v1949_v21 = vld [vmem:[#allocation11 + $0x44] ss:$16 sps:$4 sm:$0xff]   ;;  %v1947_v23 = vld [vmem:[#allocation11 + $0x40] ss:$16 sps:$4 sm:$0xff]  }
  0x65   :  { %496 = vmatpush1.bf16.msra.mxu1 %v1887_v25  ;;  %v1952_v22 = vld [vmem:[#allocation11 + $0x244] ss:$16 sps:$4 sm:$0xff]   ;;  %v1950_v24 = vld [vmem:[#allocation11 + $0x240] ss:$16 sps:$4 sm:$0xff]  }
  0x66   :  { %497 = vmatprep.subr.bf16.mxu1 %v1895_v28  ;;  %v1955_v25 = vld [vmem:[#allocation11 + $0x24] ss:$16 sps:$4 sm:$0xff]   ;;  %v1956_v28 = vld [vmem:[#allocation11 + $0x220] ss:$16 sps:$4 sm:$0xff]  }
  0x67   :  { %535 = vmatpush1.bf16.msra.mxu0 %v1884_v26  ;;  %v1958_v26 = vld [vmem:[#allocation11 + $0x224] ss:$16 sps:$4 sm:$0xff]   ;;  %v1977_v43 = vld [vmem:[#allocation11 + $0x1a0] ss:$16 sps:$4 sm:$0xff]  }
  0x68   :  { %536 = vmatprep.subr.bf16.mxu0 %v1892_v27  ;;  %v1953_v27 = vld [vmem:[#allocation11 + $0x20] ss:$16 sps:$4 sm:$0xff]  }
  0x69   :  { %498 = vmatpush1.bf16.msra.mxu1 %v1893_v29  ;;  %v1961_v29 = vld [vmem:[#allocation11 + $0x4] ss:$16 sps:$4 sm:$0xff]  }
  0x6a   :  { %499 = vmatprep.subr.bf16.mxu1 %v1901_v30  ;;  %v1964_v30 = vld [vmem:[#allocation11 + $0x204] ss:$16 sps:$4 sm:$0xff]  }
  0x6b   :  { %537 = vmatpush1.bf16.msra.mxu0 %v1890_v31  ;;  %v1959_v31 = vld [vmem:[#allocation11] ss:$16 sps:$4 sm:$0xff]  }
  0x6c   :  { %538 = vmatprep.subr.bf16.mxu0 %v1898_v32  ;;  %v1962_v32 = vld [vmem:[#allocation11 + $0x200] ss:$16 sps:$4 sm:$0xff]  }
  0x6d   :  { %500 = vmatpush1.bf16.msra.mxu1 %v1899_v33  ;;  %v1967_v33 = vld [vmem:[#allocation11 + $0x1e4] ss:$16 sps:$4 sm:$0xff]  }
  0x6e   :  { %501 = vmatprep.subr.bf16.mxu1 %v1907_v37  ;;  %v1973_v37 = vld [vmem:[#allocation11 + $0x1c4] ss:$16 sps:$4 sm:$0xff]  }
  0x6f   :  { %539 = vmatpush1.bf16.msra.mxu0 %v1896_v34  ;;  %v1970_v34 = vld [vmem:[#allocation11 + $0x3e4] ss:$16 sps:$4 sm:$0xff]  }
  0x70   :  { %540 = vmatprep.subr.bf16.mxu0 %v1904_v35  ;;  %v1965_v35 = vld [vmem:[#allocation11 + $0x1e0] ss:$16 sps:$4 sm:$0xff]  }
  0x71   :  { %502 = vmatpush1.bf16.msra.mxu1 %v1905_v39  ;;  %v1971_v39 = vld [vmem:[#allocation11 + $0x1c0] ss:$16 sps:$4 sm:$0xff]  }
  0x72   :  { %637 = vmatprep.subr.bf16.mxu1 %v1913_v41  ;;  %v1979_v41 = vld [vmem:[#allocation11 + $0x1a4] ss:$16 sps:$4 sm:$0xff]  }
  0x73   :  { %541 = vmatpush1.bf16.msra.mxu0 %v1902_v36  ;;  %v1968_v36 = vld [vmem:[#allocation11 + $0x3e0] ss:$16 sps:$4 sm:$0xff]  }
  0x74   :  { %542 = vmatprep.subr.bf16.mxu0 %v1910_v38  ;;  %v1976_v38 = vld [vmem:[#allocation11 + $0x3c4] ss:$16 sps:$4 sm:$0xff]  }
  0x77   :  { %543 = vmatpush1.bf16.msra.mxu0 %v1908_v40  ;;  %v1974_v40 = vld [vmem:[#allocation11 + $0x3c0] ss:$16 sps:$4 sm:$0xff]  }
  0x78   :  { %678 = vmatprep.subr.bf16.mxu0 %v1916_v42  ;;  %v1982_v42 = vld [vmem:[#allocation11 + $0x3a4] ss:$16 sps:$4 sm:$0xff]  }
 0x112   :  { %v205_v48 = vpop.f32.mrf.mxu0 }
 0x113   :  { %v206_v49 = vadd.f32 %v205_v48, %v119_v47  ;;  %v1980_v47 = vld [vmem:[#allocation11 + $0x3a0] ss:$16 sps:$4 sm:$0xff]   ;;  %v1985_v48 = vld [vmem:[#allocation11 + $0x184] ss:$16 sps:$4 sm:$0xff]  }
 0x114   :  { %v2360_v50 = vpop.f32.mrf.mxu0  ;;  %v2362_v51 = vpop.f32.mrf.mxu1 }
 0x115   :  { %v293_v52 = vmax.f32 %v206_v49, 0.0  ;;  %v1988_v49 = vld [vmem:[#allocation11 + $0x384] ss:$16 sps:$4 sm:$0xff]  }
 0x116   :  { %v209_v53 = vpop.f32.mrf.mxu0  ;;  %v2364_v55 = vpop.f32.mrf.mxu1 }
 0x117   :  { %v294_v56 = vpack.c.bf16 %v293_v52, %v293_v52  ;;  %v1983_v52 = vld [vmem:[#allocation11 + $0x180] ss:$16 sps:$4 sm:$0xff]  }
 0x118   :  { %v210_v58 = vpop.f32.mrf.mxu0  ;;  %v250_v61 = vpop.f32.mrf.mxu1  ;;  %v1986_v53 = vld [vmem:[#allocation11 + $0x380] ss:$16 sps:$4 sm:$0xff]  }
 0x119   :  { %520 = vmatmul.mubr.bf16.vlgmr.msra.gmra.mxu1 %v294_v56  ;;  %561 = vmatmul.mubr.bf16.vlgmr.msra.gmra.mxu0 %v294_v56  ;;  %v1994_v56 = vld [vmem:[#allocation11 + $0x364] ss:$16 sps:$4 sm:$0xff]   ;;  %v1992_v58 = vld [vmem:[#allocation11 + $0x360] ss:$16 sps:$4 sm:$0xff]  }
 0x11a   :  { %638 = vmatpush1.bf16.msra.mxu1 %v1911_v54  ;;  %655 = vmatprep.mubr.bf16.mxu1 %v2269_v0  ;;  %v2367_v62 = vpop.f32.mrf.mxu0  ;;  %v251_v63 = vpop.f32.mrf.mxu1  ;;  %v1991_v54 = vld [vmem:[#allocation11 + $0x164] ss:$16 sps:$4 sm:$0xff]   ;;  %v1995_v61 = vld [vmem:[#allocation11 + $0x140] ss:$16 sps:$4 sm:$0xff]  }
 0x11b   :  { %679 = vmatpush1.bf16.msra.mxu0 %v1914_v57  ;;  %696 = vmatprep.mubr.bf16.mxu0 %v2269_v0  ;;  %v1931_v0 = vld [vmem:[#allocation11 + $0xa4] ss:$16 sps:$4 sm:$0xff]   ;;  %v1989_v57 = vld [vmem:[#allocation11 + $0x160] ss:$16 sps:$4 sm:$0xff]  }
 0x11c   :  { %1473 = vmatprep.subr.bf16.mxu1 %v1919_v59  ;;  %1514 = vmatprep.subr.bf16.mxu0 %v1922_v60  ;;  %v1840_v1 = vpop.f32.mrf.mxu0  ;;  %v1997_v59 = vld [vmem:[#allocation11 + $0x144] ss:$16 sps:$4 sm:$0xff]   ;;  %v1998_v63 = vld [vmem:[#allocation11 + $0x340] ss:$16 sps:$4 sm:$0xff]  }
 0x11d   :  { %v2000_v60 = vld [vmem:[#allocation11 + $0x344] ss:$16 sps:$4 sm:$0xff]  }
 0x11e   :  { %v290_v5 = vpop.f32.mrf.mxu0  ;;  %v2003_v1 = vld [vmem:[#allocation11 + $0x124] ss:$16 sps:$4 sm:$0xff]  }
 0x11f   :  { %v2004_v5 = vld [vmem:[#allocation11 + $0x320] ss:$16 sps:$4 sm:$0xff]  }
 0x120   :  { %v1841_v8 = vpop.f32.mrf.mxu0 }
 0x121   :  { %1704 = vmatmul.mubr.msk.bf16.vlgmr.msra.gmra.mxu1 %vm167_vm0, %v2342_v4  ;;  %1705 = vmatmul.mubr.msk.bf16.vlgmr.msra.gmra.mxu0 %vm167_vm0, %v2342_v4  ;;  %v1938_v4 = vld [vmem:[#allocation11 + $0x280] ss:$16 sps:$4 sm:$0xff]  }
 0x122   :  { %1474 = vmatpush1.bf16.msra.mxu1 %v1917_v2  ;;  %1515 = vmatpush1.bf16.msra.mxu0 %v1920_v3  ;;  %v2006_v2 = vld [vmem:[#allocation11 + $0x324] ss:$16 sps:$4 sm:$0xff]   ;;  %v2001_v3 = vld [vmem:[#allocation11 + $0x120] ss:$16 sps:$4 sm:$0xff]  }
 0x123   :  { %1475 = vmatprep.subr.bf16.mxu1 %v1925_v6  ;;  %1516 = vmatprep.subr.bf16.mxu0 %v1928_v7  ;;  %v2009_v6 = vld [vmem:[#allocation11 + $0x104] ss:$16 sps:$4 sm:$0xff]   ;;  %v2007_v8 = vld [vmem:[#allocation11 + $0x100] ss:$16 sps:$4 sm:$0xff]  }
 0x124   :  { %v2012_v7 = vld [vmem:[#allocation11 + $0x304] ss:$16 sps:$4 sm:$0xff]  }
 0x126   :  { %1476 = vmatpush1.bf16.msra.mxu1 %v1923_v9  ;;  %1517 = vmatpush1.bf16.msra.mxu0 %v1926_v10  ;;  %v2010_v9 = vld [vmem:[#allocation11 + $0x300] ss:$16 sps:$4 sm:$0xff]   ;;  %v2015_v10 = vld [vmem:[#allocation11 + $0xec] ss:$16 sps:$4 sm:$0xff]  }
 0x127   :  { %1477 = vmatprep.subr.bf16.mxu1 %v1931_v0  ;;  %1518 = vmatprep.subr.bf16.mxu0 %v1934_v11  ;;  %v2018_v0 = vld [vmem:[#allocation11 + $0x2ec] ss:$16 sps:$4 sm:$0xff]   ;;  %v122_v11 = vsub.s32 1, %v2352_v44 }
 0x12a   :  { %1478 = vmatpush1.bf16.msra.mxu1 %v1929_v12  ;;  %1519 = vmatpush1.bf16.msra.mxu0 %v1932_v13  ;;  %v130_v12 = vsub.s32 3, %v2352_v44  ;;  %v126_v13 = vsub.s32 2, %v2352_v44 }
 0x12b   :  { %1479 = vmatprep.subr.bf16.mxu1 %v1937_v14  ;;  %1520 = vmatprep.subr.bf16.mxu0 %v1940_v15  ;;  %v134_v14 = vsub.s32 4, %v2352_v44  ;;  %v123_v15 = vrot.slane %v2355_v46, %v122_v11 }
 0x12e   :  { %1480 = vmatpush1.bf16.msra.mxu1 %v1935_v16  ;;  %1521 = vmatpush1.bf16.msra.mxu0 %v1938_v4  ;;  %v131_v16 = vrot.slane %v2355_v46, %v130_v12  ;;  %v127_v4 = vrot.slane %v2355_v46, %v126_v13 }
 0x12f   :  { %1481 = vmatprep.subr.bf16.mxu1 %v1943_v17  ;;  %1522 = vmatprep.subr.bf16.mxu0 %v1946_v18  ;;  %v135_v17 = vrot.slane %v2355_v46, %v134_v14  ;;  %v208_v18 = vadd.f32 %v2360_v50, %v123_v15  ;;  %v2391_v50 = vld [vmem:[%s2429_s5] sm:$0xf]  ;;  %s2272_s5 = smov [#allocation13]  }
 0x130   :  { %v2048_v14 = vld [vmem:[#allocation11 + $0x24c] ss:$16 sps:$4 sm:$0xff]   ;;  %v2043_v15 = vld [vmem:[#allocation11 + $0x48] ss:$16 sps:$4 sm:$0xff]   ;;  %s1648_s9 = sshll.u32 %s2272_s5, 4  ;;  %s1649_s9 = int_to_ptr.vmem [resolvable:$true] %s1648_s9 }
 0x131   :  { %s2229_s10 = scalar_lea.vmem %s1649_s9, 512  ;;  %p2234_p3 = scmp.lt.s32.totalorder %s1649_s9, %s1649_s9 }
 0x132   :  { %1482 = vmatpush1.bf16.msra.mxu1 %v1941_v19  ;;  %1523 = vmatpush1.bf16.msra.mxu0 %v1944_v20  ;;  %v249_v19 = vadd.f32 %v2364_v55, %v131_v16  ;;  %v2046_v16 = vld [vmem:[#allocation11 + $0x248] ss:$16 sps:$4 sm:$0xff]   ;;  %p2230_p2 = scmp.ne.s32.totalorder %s1649_s9, %s2229_s10  ;;  %p2235_p4 = scmp.lt.s32.totalorder %s2229_s10, %s2229_s10 }
 0x133   :  { %1483 = vmatprep.subr.bf16.mxu1 %v1949_v21  ;;  %1524 = vmatprep.subr.bf16.mxu0 %v1952_v22  ;;  %v247_v22 = vadd.f32 %v2362_v51, %v127_v4  ;;  %v594_v51 = vrot.slane %v2391_v50, %v126_v13  ;;  %v2045_v13 = vld [vmem:[#allocation11 + $0x4c] ss:$16 sps:$4 sm:$0xff]  }
 0x134   :  { %v2051_v4 = vld [vmem:[#allocation11 + $0x2c] ss:$16 sps:$4 sm:$0xff]   ;;  %p2236_p5 = por %p2235_p4, %p2234_p3 }
 0x136   :  { %1484 = vmatpush1.bf16.msra.mxu1 %v1947_v23  ;;  %1525 = vmatpush1.bf16.msra.mxu0 %v1950_v24  ;;  %v288_v23 = vadd.f32 %v2367_v62, %v135_v17  ;;  %v2054_v17 = vld [vmem:[#allocation11 + $0x22c] ss:$16 sps:$4 sm:$0xff]   ;;  %p2237_p6 = pnand %p2236_p5, %p2230_p2 }
 0x137   :  { %1485 = vmatprep.subr.bf16.mxu1 %v1955_v25  ;;  %1526 = vmatprep.subr.bf16.mxu0 %v1958_v26 }
 0x13a   :  { %1486 = vmatpush1.bf16.msra.mxu1 %v1953_v27  ;;  %1527 = vmatpush1.bf16.msra.mxu0 %v1956_v28 }
 0x13b   :  { %1487 = vmatprep.subr.bf16.mxu1 %v1961_v29  ;;  %1528 = vmatprep.subr.bf16.mxu0 %v1964_v30 }
 0x13e   :  { %1488 = vmatpush1.bf16.msra.mxu1 %v1959_v31  ;;  %1529 = vmatpush1.bf16.msra.mxu0 %v1962_v32 }
 0x13f   :  { %1489 = vmatprep.subr.bf16.mxu1 %v1967_v33  ;;  %1530 = vmatprep.subr.bf16.mxu0 %v1970_v34 }
 0x142   :  { %1490 = vmatpush2.bf16.msra.mxu1 %v1965_v35  ;;  %1531 = vmatpush2.bf16.msra.mxu0 %v1968_v36 }
 0x143   :  { %1491 = vmatprep.subr.bf16.mxu1 %v1973_v37  ;;  %1532 = vmatprep.subr.bf16.mxu0 %v1976_v38  ;;  %v2013_v37 = vld [vmem:[#allocation11 + $0xe8] ss:$16 sps:$4 sm:$0xff]  }
 0x144   :  { %v2016_v38 = vld [vmem:[#allocation11 + $0x2e8] ss:$16 sps:$4 sm:$0xff]  }
 0x146   :  { %1492 = vmatpush2.bf16.msra.mxu1 %v1971_v39  ;;  %1533 = vmatpush2.bf16.msra.mxu0 %v1974_v40  ;;  %v598_v39 = vrot.slane %v2391_v50, %v130_v12  ;;  %v2040_v12 = vld [vmem:[#allocation11 + $0x268] ss:$16 sps:$4 sm:$0xff]  }
 0x147   :  { %1493 = vmatprep.subr.bf16.mxu1 %v1979_v41  ;;  %1534 = vmatprep.subr.bf16.mxu0 %v1982_v42 }
 0x14a   :  { %1494 = vmatpush2.bf16.msra.mxu1 %v1977_v43  ;;  %1535 = vmatpush2.bf16.msra.mxu0 %v1980_v47  ;;  %v2021_v47 = vld [vmem:[#allocation11 + $0xcc] ss:$16 sps:$4 sm:$0xff]  }
 0x14b   :  { %1495 = vmatprep.subr.bf16.mxu1 %v1985_v48  ;;  %1536 = vmatprep.subr.bf16.mxu0 %v1988_v49  ;;  %v2024_v48 = vld [vmem:[#allocation11 + $0x2cc] ss:$16 sps:$4 sm:$0xff]  }
 0x14e   :  { %1496 = vmatpush2.bf16.msra.mxu1 %v1983_v52  ;;  %1537 = vmatpush2.bf16.msra.mxu0 %v1986_v53 }
 0x14f   :  { %1497 = vmatprep.subr.bf16.mxu1 %v1991_v54  ;;  %1538 = vmatprep.subr.bf16.mxu0 %v1994_v56  ;;  %v2019_v54 = vld [vmem:[#allocation11 + $0xc8] ss:$16 sps:$4 sm:$0xff]  }
 0x150   :  { %v2022_v56 = vld [vmem:[#allocation11 + $0x2c8] ss:$16 sps:$4 sm:$0xff]  }
 0x152   :  { %1498 = vmatpush2.bf16.msra.mxu1 %v1989_v57  ;;  %1539 = vmatpush2.bf16.msra.mxu0 %v1992_v58  ;;  %v2027_v58 = vld [vmem:[#allocation11 + $0xac] ss:$16 sps:$4 sm:$0xff]  }
 0x153   :  { %1499 = vmatprep.subr.bf16.mxu1 %v1997_v59  ;;  %1540 = vmatprep.subr.bf16.mxu0 %v2000_v60  ;;  %v2030_v59 = vld [vmem:[#allocation11 + $0x2ac] ss:$16 sps:$4 sm:$0xff]  }
 0x156   :  { %1500 = vmatpush2.bf16.msra.mxu1 %v1995_v61  ;;  %1541 = vmatpush2.bf16.msra.mxu0 %v1998_v63 }
 0x157   :  { %1501 = vmatprep.subr.bf16.mxu1 %v2003_v1  ;;  %1542 = vmatprep.subr.bf16.mxu0 %v2006_v2  ;;  %v2025_v2 = vld [vmem:[#allocation11 + $0xa8] ss:$16 sps:$4 sm:$0xff]  }
 0x15a   :  { %1502 = vmatpush2.bf16.msra.mxu1 %v2001_v3  ;;  %1543 = vmatpush2.bf16.msra.mxu0 %v2004_v5  ;;  %v2028_v3 = vld [vmem:[#allocation11 + $0x2a8] ss:$16 sps:$4 sm:$0xff]   ;;  %v2033_v5 = vld [vmem:[#allocation11 + $0x8c] ss:$16 sps:$4 sm:$0xff]  }
 0x15b   :  { %1503 = vmatprep.subr.bf16.mxu1 %v2009_v6  ;;  %1544 = vmatprep.subr.bf16.mxu0 %v2012_v7  ;;  %v2036_v6 = vld [vmem:[#allocation11 + $0x28c] ss:$16 sps:$4 sm:$0xff]   ;;  %v2031_v7 = vld [vmem:[#allocation11 + $0x88] ss:$16 sps:$4 sm:$0xff]  }
 0x15e   :  { %1504 = vmatpush2.bf16.msra.mxu1 %v2007_v8  ;;  %1545 = vmatpush2.bf16.msra.mxu0 %v2010_v9  ;;  %v2034_v8 = vld [vmem:[#allocation11 + $0x288] ss:$16 sps:$4 sm:$0xff]   ;;  %v2039_v9 = vld [vmem:[#allocation11 + $0x6c] ss:$16 sps:$4 sm:$0xff]  }
 0x15f   :  { %1555 = vmatprep.subr.bf16.mxu1 %v2015_v10  ;;  %1596 = vmatprep.subr.bf16.mxu0 %v2018_v0  ;;  %v2042_v10 = vld [vmem:[#allocation11 + $0x26c] ss:$16 sps:$4 sm:$0xff]   ;;  %v2037_v0 = vld [vmem:[#allocation11 + $0x68] ss:$16 sps:$4 sm:$0xff]  }
 0x1d9   :  { %v521_v20 = vpop.f32.mrf.mxu1  ;;  %v562_v21 = vpop.f32.mrf.mxu0 }
 0x1da   :  { %v522_v24 = vadd.f32 %v521_v20, %v208_v18  ;;  %v563_v25 = vadd.f32 %v562_v21, %v249_v19  ;;  %v2049_v18 = vld [vmem:[#allocation11 + $0x28] ss:$16 sps:$4 sm:$0xff]   ;;  %v2057_v20 = vld [vmem:[#allocation11 + $0xc] ss:$16 sps:$4 sm:$0xff]  }
 0x1db   :  { %v523_v26 = vpop.f32.mrf.mxu1  ;;  %v564_v27 = vpop.f32.mrf.mxu0  ;;  %v2052_v19 = vld [vmem:[#allocation11 + $0x228] ss:$16 sps:$4 sm:$0xff]   ;;  %v2060_v21 = vld [vmem:[#allocation11 + $0x20c] ss:$16 sps:$4 sm:$0xff]  }
 0x1dc   :  { %v524_v28 = vadd.f32 %v523_v26, %v247_v22  ;;  %v565_v29 = vadd.f32 %v564_v27, %v288_v23  ;;  %v569_v30 = vmax.f32 %v522_v24, 0.0  ;;  %v571_v31 = vmax.f32 %v563_v25, 0.0  ;;  %v2055_v22 = vld [vmem:[#allocation11 + $0x8] ss:$16 sps:$4 sm:$0xff]   ;;  %v2063_v24 = vld [vmem:[#allocation11 + $0x1ec] ss:$16 sps:$4 sm:$0xff]  }
 0x1dd   :  { %v525_v32 = vpop.f32.mrf.mxu1  ;;  %v566_v46 = vpop.f32.mrf.mxu0  ;;  %v2058_v23 = vld [vmem:[#allocation11 + $0x208] ss:$16 sps:$4 sm:$0xff]   ;;  %v2066_v25 = vld [vmem:[#allocation11 + $0x3ec] ss:$16 sps:$4 sm:$0xff]  }
 0x1de   :  { %v570_v55 = vmax.f32 %v524_v28, 0.0  ;;  %v572_v33 = vmax.f32 %v565_v29, 0.0  ;;  %v2395_v40 = vpack.c.bf16 %v569_v30, %v569_v30  ;;  %v2397_v41 = vpack.c.bf16 %v571_v31, %v571_v31  ;;  %v2061_v26 = vld [vmem:[#allocation11 + $0x1e8] ss:$16 sps:$4 sm:$0xff]   ;;  %v2069_v28 = vld [vmem:[#allocation11 + $0x1cc] ss:$16 sps:$4 sm:$0xff]  }
 0x1df   :  { %v526_v62 = vpop.f32.mrf.mxu1  ;;  %v567_v34 = vpop.f32.mrf.mxu0  ;;  %v2064_v27 = vld [vmem:[#allocation11 + $0x3e8] ss:$16 sps:$4 sm:$0xff]   ;;  %v2072_v29 = vld [vmem:[#allocation11 + $0x3cc] ss:$16 sps:$4 sm:$0xff]  }
 0x1e0   :  { %v574_v35 = vpack.c.bf16 %v570_v55, %v570_v55  ;;  %v576_v36 = vpack.c.bf16 %v572_v33, %v572_v33  ;;  %v2067_v30 = vld [vmem:[#allocation11 + $0x1c8] ss:$16 sps:$4 sm:$0xff]   ;;  %v2075_v32 = vld [vmem:[#allocation11 + $0x1ac] ss:$16 sps:$4 sm:$0xff]  }
 0x1e1   :  { %v2399_v42 = vpop.f32.mrf.mxu1  ;;  %v698_v43 = vpop.f32.mrf.mxu0  ;;  %v2070_v31 = vld [vmem:[#allocation11 + $0x3c8] ss:$16 sps:$4 sm:$0xff]   ;;  %v2078_v46 = vld [vmem:[#allocation11 + $0x3ac] ss:$16 sps:$4 sm:$0xff]  }
 0x1e2   :  { %1505 = vmatprep.mubr.bf16.mxu1 %v574_v35  ;;  %1546 = vmatprep.mubr.bf16.mxu0 %v576_v36  ;;  %v2401_v49 = vadd.f32 %v698_v43, %v594_v51  ;;  %v2073_v55 = vld [vmem:[#allocation11 + $0x1a8] ss:$16 sps:$4 sm:$0xff]   ;;  %v2081_v51 = vld [vmem:[#allocation11 + $0x18c] ss:$16 sps:$4 sm:$0xff]  }
 0x1e3   :  { %1506 = vmatmul.mubr.bf16.vlgmr.msra.gmra.mxu1 %v2395_v40  ;;  %1547 = vmatmul.mubr.bf16.vlgmr.msra.gmra.mxu0 %v2397_v41  ;;  %v2405_v52 = vpop.f32.mrf.mxu1  ;;  %v700_v53 = vpop.f32.mrf.mxu0  ;;  %v2076_v33 = vld [vmem:[#allocation11 + $0x3a8] ss:$16 sps:$4 sm:$0xff]   ;;  %v2084_v62 = vld [vmem:[#allocation11 + $0x38c] ss:$16 sps:$4 sm:$0xff]  }
 0x1e4   :  { %1556 = vmatpush1.bf16.msra.mxu1 %v2013_v37  ;;  %1597 = vmatpush1.bf16.msra.mxu0 %v2016_v38  ;;  %v2407_v57 = vadd.f32 %v700_v53, %v598_v39  ;;  %v2079_v34 = vld [vmem:[#allocation11 + $0x188] ss:$16 sps:$4 sm:$0xff]   ;;  %v2090_v37 = vld [vmem:[#allocation11 + $0x36c] ss:$16 sps:$4 sm:$0xff]  }
 0x1e5   :  { %1587 = vmatprep.mubr.bf16.mxu1 %v574_v35  ;;  %1628 = vmatprep.mubr.bf16.mxu0 %v576_v36  ;;  %v661_v60 = vpop.f32.mrf.mxu1  ;;  %v702_v61 = vpop.f32.mrf.mxu0  ;;  %v2082_v35 = vld [vmem:[#allocation11 + $0x388] ss:$16 sps:$4 sm:$0xff]   ;;  %v2087_v36 = vld [vmem:[#allocation11 + $0x16c] ss:$16 sps:$4 sm:$0xff]  }
 0x1e6   :  { %1557 = vmatprep.subr.bf16.mxu1 %v2021_v47  ;;  %1598 = vmatprep.subr.bf16.mxu0 %v2024_v48  ;;  %v2085_v38 = vld [vmem:[#allocation11 + $0x168] ss:$16 sps:$4 sm:$0xff]   ;;  %v2093_v43 = vld [vmem:[#allocation11 + $0x14c] ss:$16 sps:$4 sm:$0xff]  }
 0x1e7   :  { %v662_v63 = vpop.f32.mrf.mxu1  ;;  %v703_v1 = vpop.f32.mrf.mxu0  ;;  %v2088_v39 = vld [vmem:[#allocation11 + $0x368] ss:$16 sps:$4 sm:$0xff]   ;;  %v2096_v47 = vld [vmem:[#allocation11 + $0x34c] ss:$16 sps:$4 sm:$0xff]  }
 0x1e8   :  { %1558 = vmatpush1.bf16.msra.mxu1 %v2019_v54  ;;  %1599 = vmatpush1.bf16.msra.mxu0 %v2022_v56  ;;  %v2091_v48 = vld [vmem:[#allocation11 + $0x148] ss:$16 sps:$4 sm:$0xff]   ;;  %v2099_v54 = vld [vmem:[#allocation11 + $0x12c] ss:$16 sps:$4 sm:$0xff]  }
 0x1e9   :  { %1559 = vmatprep.subr.bf16.mxu1 %v2027_v58  ;;  %1600 = vmatprep.subr.bf16.mxu0 %v2030_v59  ;;  %v2094_v53 = vld [vmem:[#allocation11 + $0x348] ss:$16 sps:$4 sm:$0xff]   ;;  %v2102_v56 = vld [vmem:[#allocation11 + $0x32c] ss:$16 sps:$4 sm:$0xff]  }
 0x1ea   :  { %v2097_v58 = vld [vmem:[#allocation11 + $0x128] ss:$16 sps:$4 sm:$0xff]   ;;  %v2105_v60 = vld [vmem:[#allocation11 + $0x10c] ss:$16 sps:$4 sm:$0xff]  }
 0x1eb   :  { %v2100_v59 = vld [vmem:[#allocation11 + $0x328] ss:$16 sps:$4 sm:$0xff]   ;;  %v2108_v61 = vld [vmem:[#allocation11 + $0x30c] ss:$16 sps:$4 sm:$0xff]  }
 0x1ec   :  { %1560 = vmatpush1.bf16.msra.mxu1 %v2025_v2  ;;  %1601 = vmatpush1.bf16.msra.mxu0 %v2028_v3  ;;  %v2103_v63 = vld [vmem:[#allocation11 + $0x108] ss:$16 sps:$4 sm:$0xff]   ;;  %v586_v2 = vrot.slane %v2391_v50, %v118_v45  ;;  %v590_v3 = vrot.slane %v2391_v50, %v122_v11 }
 0x1ed   :  { %1561 = vmatprep.subr.bf16.mxu1 %v2033_v5  ;;  %1602 = vmatprep.subr.bf16.mxu0 %v2036_v6  ;;  %v2106_v1 = vld [vmem:[#allocation11 + $0x308] ss:$16 sps:$4 sm:$0xff]  }
 0x1ee   :  { %v658_v5 = vadd.f32 %v2399_v42, %v586_v2 }
 0x1f0   :  { %1562 = vmatpush1.bf16.msra.mxu1 %v2031_v7  ;;  %1603 = vmatpush1.bf16.msra.mxu0 %v2034_v8  ;;  %v660_v8 = vadd.f32 %v2405_v52, %v590_v3 }
 0x1f1   :  { %1563 = vmatprep.subr.bf16.mxu1 %v2039_v9  ;;  %1604 = vmatprep.subr.bf16.mxu0 %v2042_v10 }
 0x1f4   :  { %1564 = vmatpush1.bf16.msra.mxu1 %v2037_v0  ;;  %1605 = vmatpush1.bf16.msra.mxu0 %v2040_v12 }
 0x1f5   :  { %1565 = vmatprep.subr.bf16.mxu1 %v2045_v13  ;;  %1606 = vmatprep.subr.bf16.mxu0 %v2048_v14 }
 0x1f8   :  { %1566 = vmatpush1.bf16.msra.mxu1 %v2043_v15  ;;  %1607 = vmatpush1.bf16.msra.mxu0 %v2046_v16 }
 0x1f9   :  { %1567 = vmatprep.subr.bf16.mxu1 %v2051_v4  ;;  %1608 = vmatprep.subr.bf16.mxu0 %v2054_v17 }
 0x1fc   :  { %1568 = vmatpush1.bf16.msra.mxu1 %v2049_v18  ;;  %1609 = vmatpush1.bf16.msra.mxu0 %v2052_v19 }
 0x1fd   :  { %1569 = vmatprep.subr.bf16.mxu1 %v2057_v20  ;;  %1610 = vmatprep.subr.bf16.mxu0 %v2060_v21 }
 0x200   :  { %1570 = vmatpush1.bf16.msra.mxu1 %v2055_v22  ;;  %1611 = vmatpush1.bf16.msra.mxu0 %v2058_v23 }
 0x201   :  { %1571 = vmatprep.subr.bf16.mxu1 %v2063_v24  ;;  %1612 = vmatprep.subr.bf16.mxu0 %v2066_v25 }
 0x204   :  { %1572 = vmatpush2.bf16.msra.mxu1 %v2061_v26  ;;  %1613 = vmatpush2.bf16.msra.mxu0 %v2064_v27 }
 0x205   :  { %1573 = vmatprep.subr.bf16.mxu1 %v2069_v28  ;;  %1614 = vmatprep.subr.bf16.mxu0 %v2072_v29 }
 0x208   :  { %1574 = vmatpush2.bf16.msra.mxu1 %v2067_v30  ;;  %1615 = vmatpush2.bf16.msra.mxu0 %v2070_v31 }
 0x209   :  { %1575 = vmatprep.subr.bf16.mxu1 %v2075_v32  ;;  %1616 = vmatprep.subr.bf16.mxu0 %v2078_v46 }
 0x20c   :  { %1576 = vmatpush2.bf16.msra.mxu1 %v2073_v55  ;;  %1617 = vmatpush2.bf16.msra.mxu0 %v2076_v33 }
 0x20d   :  { %1577 = vmatprep.subr.bf16.mxu1 %v2081_v51  ;;  %1618 = vmatprep.subr.bf16.mxu0 %v2084_v62 }
 0x210   :  { %1578 = vmatpush2.bf16.msra.mxu1 %v2079_v34  ;;  %1619 = vmatpush2.bf16.msra.mxu0 %v2082_v35 }
 0x211   :  { %1579 = vmatprep.subr.bf16.mxu1 %v2087_v36  ;;  %1620 = vmatprep.subr.bf16.mxu0 %v2090_v37 }
 0x214   :  { %1580 = vmatpush2.bf16.msra.mxu1 %v2085_v38  ;;  %1621 = vmatpush2.bf16.msra.mxu0 %v2088_v39 }
 0x215   :  { %1581 = vmatprep.subr.bf16.mxu1 %v2093_v43  ;;  %1622 = vmatprep.subr.bf16.mxu0 %v2096_v47 }
 0x218   :  { %1582 = vmatpush2.bf16.msra.mxu1 %v2091_v48  ;;  %1623 = vmatpush2.bf16.msra.mxu0 %v2094_v53 }
 0x219   :  { %1583 = vmatprep.subr.bf16.mxu1 %v2099_v54  ;;  %1624 = vmatprep.subr.bf16.mxu0 %v2102_v56 }
 0x21c   :  { %1584 = vmatpush2.bf16.msra.mxu1 %v2097_v58  ;;  %1625 = vmatpush2.bf16.msra.mxu0 %v2100_v59 }
 0x21d   :  { %1585 = vmatprep.subr.bf16.mxu1 %v2105_v60  ;;  %1626 = vmatprep.subr.bf16.mxu0 %v2108_v61 }
 0x220   :  { %1586 = vmatpush2.bf16.msra.mxu1 %v2103_v63  ;;  %1627 = vmatpush2.bf16.msra.mxu0 %v2106_v1 }
 0x223   :  { %1588 = vmatmul.mubr.bf16.vlgmr.msra.gmra.mxu1 %v2395_v40  ;;  %1629 = vmatmul.mubr.bf16.vlgmr.msra.gmra.mxu0 %v2397_v41 }
 0x2a3   :  { %v1507_v6 = vpop.f32.mrf.mxu1  ;;  %v1548_v7 = vpop.f32.mrf.mxu0 }
 0x2a4   :  { %v1508_v9 = vadd.f32 %v1507_v6, %v658_v5 }
 0x2a5   :  { %v1509_v10 = vpop.f32.mrf.mxu1  ;;  %v1550_v0 = vpop.f32.mrf.mxu0 }
 0x2a6   :  { %v1549_v40 = vadd.f32 %v1548_v7, %v1508_v9  ;;  %v1510_v12 = vadd.f32 %v1509_v10, %v660_v8 }
 0x2a7   :  { %v1511_v41 = vpop.f32.mrf.mxu1  ;;  %v1552_v13 = vpop.f32.mrf.mxu0 }
 0x2a8   :  { %1637 = vst [vmem:[#allocation13] sm:$0xff] %v1549_v40  ;;  %v1551_v14 = vadd.f32 %v1550_v0, %v1510_v12 }
 0x2a9   :  { %v1512_v45 = vpop.f32.mrf.mxu1  ;;  %v1553_v15 = vpop.f32.mrf.mxu0 }
 0x2aa   :  { %1638 = vst [vmem:[#allocation13 + $0x8] sm:$0xff] %v1551_v14 }
 0x2e3   :  { %v1589_v44 = vpop.f32.mrf.mxu1  ;;  %v1630_v11 = vpop.f32.mrf.mxu0 }
 0x2e4   :  { %v1590_v50 = vadd.f32 %v1589_v44, %v2401_v49 }
 0x2e5   :  { %v1591_v42 = vpop.f32.mrf.mxu1  ;;  %v1632_v16 = vpop.f32.mrf.mxu0 }
 0x2e6   :  { %v1631_v52 = vadd.f32 %v1630_v11, %v1590_v50  ;;  %v1592_v4 = vadd.f32 %v1591_v42, %v2407_v57 }
 0x2e7   :  { %v1593_v17 = vpop.f32.mrf.mxu1  ;;  %v1634_v18 = vpop.f32.mrf.mxu0 }
 0x2e8   :  { %1639 = vst [vmem:[#allocation13 + $0x10] sm:$0xff] %v1631_v52  ;;  %v1633_v19 = vadd.f32 %v1632_v16, %v1592_v4 }
 0x2e9   :  { %v1594_v20 = vpop.f32.mrf.mxu1  ;;  %v1635_v21 = vpop.f32.mrf.mxu0 }
 0x2ea   :  { %1641 = vst.msk [vmem:[#allocation13 + $0x18] sm:$0xff] %vm1640_vm2, %v1633_v19 }
 0x2eb   :  { %2240 = shalt.err (!%p2237_p6)
}
 0x2ec   :  { %1651 = dma.vmem_to_hbm [thread:$0]  %s1649_s9, 512, %s2431_s7, [#allocation4]  }
 0x2ed   :  { %2257 = dma.done.wait [#allocation4], 512  }
 0x2ee   :  { %2258 = vsyncadd [#allocation4], 4294966784 }
 0x2ef   :  { %1655 = vsyncpa [#allocation3], 1 }
 0x2f0   :  { %1656 = vsyncpa [#allocation6], 1 }
 0x2f1   :  { %1657 = vsyncpa [#allocation9], 1 }
 0x2f2   :  { %1658 = vsyncpa [#allocation12], 1 }
 0x2f3   :  { %1659 = vsyncpa [#allocation4], 1 }

// kernel: tpu_custom_call.1
= control target key start
LH: loop header
LB: loop body
LE: loop exit
PB: predicated region body
PF: predicated region fallthrough
CT: control target
= control target key end

     0   :  { %12 = vsyncpa [#allocation3], 0  ;;  %s2424_s0 = inlined_call_operand.hbm [shape: f32[8,16], index: 0, kind: input, shape index: {}]   ;;  %s2425_s1 = inlined_call_operand.hbm [shape: bf16[16,640], index: 1, kind: input, shape index: {}]   ;;  %s2426_s2 = inlined_call_operand.hbm [shape: f32[1,640], index: 2, kind: input, shape index: {}]   ;;  %s2427_s3 = inlined_call_operand.hbm [shape: bf16[128,512], index: 3, kind: input, shape index: {}]   ;;  %s2428_s4 = inlined_call_operand.hbm [shape: bf16[16,512], index: 4, kind: input, shape index: {}]   ;;  %s2429_s5 = inlined_call_operand.vmem [shape: f32[1,512], index: 5, kind: input, shape index: {}]   ;;  %s2430_s6 = inlined_call_operand.hbm [shape: bf16[512,512], index: 6, kind: input, shape index: {}]   ;;  %s2431_s7 = inlined_call_operand.hbm [shape: f32[8,420], index: 7, kind: output, shape index: {}]  }
   0x1   :  { %13 = vsyncpa [#allocation6], 0 }
   0x2   :  { %14 = vsyncpa [#allocation9], 0 }
   0x3   :  { %15 = vsyncpa [#allocation12], 0 }
   0x4   :  { %16 = vsyncpa [#allocation4], 0  ;;  %s2259_s24 = smov [#allocation5]  }
   0x5   :  { %s32_s25 = sshll.u32 %s2259_s24, 4  ;;  %s33_s25 = int_to_ptr.vmem [resolvable:$true] %s32_s25 }
   0x6   :  { %s2117_s26 = scalar_lea.vmem %s33_s25, 640  ;;  %p2122_p1 = scmp.lt.s32.totalorder %s33_s25, %s33_s25 }
   0x7   :  { %p2118_p0 = scmp.ne.s32.totalorder %s33_s25, %s2117_s26  ;;  %p2123_p2 = scmp.lt.s32.totalorder %s2117_s26, %s2117_s26 }
   0x9   :  { %p2124_p3 = por %p2123_p2, %p2122_p1 }
   0xb   :  { %p2125_p4 = pnand %p2124_p3, %p2118_p0 }
   0xd   :  { %2128 = shalt.err (!%p2125_p4)
}
   0xe   :  { %s2260_s27 = smov 320   ;;  %s2261_s28 = smov 20  }
   0xf   :  { %38 = dma.hbm_to_vmem [thread:$0]  %s2425_s1, 640, %s33_s25, [#allocation6], %s2260_s27, %s2260_s27, %s2261_s28  }
  0x10   :  { %s2262_s8 = smov [#allocation8]  }
  0x11   :  { %s54_s9 = sshll.u32 %s2262_s8, 4  ;;  %s55_s9 = int_to_ptr.vmem [resolvable:$true] %s54_s9 }
  0x12   :  { %s2137_s10 = scalar_lea.vmem %s55_s9, 4096  ;;  %p2142_p6 = scmp.lt.s32.totalorder %s55_s9, %s55_s9 }
  0x13   :  { %p2138_p5 = scmp.ne.s32.totalorder %s55_s9, %s2137_s10  ;;  %p2143_p7 = scmp.lt.s32.totalorder %s2137_s10, %s2137_s10 }
  0x15   :  { %p2144_p8 = por %p2143_p7, %p2142_p6 }
  0x17   :  { %p2145_p9 = pnand %p2144_p8, %p2138_p5 }
  0x19   :  { %2148 = shalt.err (!%p2145_p9)
}
  0x1a   :  { %s2263_s11 = smov 256   ;;  %s2264_s12 = smov 16  }
  0x1b   :  { %60 = dma.hbm_to_vmem [thread:$0]  %s2427_s3, 4096, %s55_s9, [#allocation9], %s2263_s11, %s2263_s11, %s2264_s12  }
  0x1c   :  { %s2265_s1 = smov [#allocation2]   ;;  %s2266_s16 = smov [#allocation7]  }
  0x1d   :  { %s23_s15 = sshll.u32 %s2265_s1, 4  ;;  %s45_s17 = sshll.u32 %s2266_s16, 4  ;;  %s24_s15 = int_to_ptr.vmem [resolvable:$true] %s23_s15  ;;  %s46_s17 = int_to_ptr.vmem [resolvable:$true] %s45_s17 }
  0x1e   :  { %s2157_s18 = scalar_lea.vmem %s24_s15, 128  ;;  %p2162_p11 = scmp.lt.s32.totalorder %s24_s15, %s24_s15 }
  0x1f   :  { %p2158_p10 = scmp.ne.s32.totalorder %s24_s15, %s2157_s18  ;;  %p2163_p12 = scmp.lt.s32.totalorder %s2157_s18, %s2157_s18 }
  0x21   :  { %p2164_p13 = por %p2163_p12, %p2162_p11 }
  0x23   :  { %p2165_p0 = pnand %p2164_p13, %p2158_p10 }
  0x25   :  { %2168 = shalt.err (!%p2165_p0)
}
  0x26   :  { %26 = dma.hbm_to_vmem [thread:$0]  %s2424_s0, 128, %s24_s15, [#allocation3]  }
  0x27   :  { %s2177_s21 = scalar_lea.vmem %s46_s17, 80  ;;  %s2181_s3 = scalar_lea.vmem %s46_s17, 96 }
  0x28   :  { %p2178_p1 = scmp.ne.s32.totalorder %s46_s17, %s2177_s21  ;;  %p2182_p2 = scmp.lt.s32.totalorder %s46_s17, %s46_s17 }
  0x29   :  { %p2183_p3 = scmp.lt.s32.totalorder %s2181_s3, %s2177_s21 }
  0x2b   :  { %p2184_p4 = por %p2183_p3, %p2182_p2 }
  0x2d   :  { %p2185_p5 = pnand %p2184_p4, %p2178_p1 }
  0x2f   :  { %2188 = shalt.err (!%p2185_p5)
}
  0x30   :  { %48 = dma.hbm_to_vmem [thread:$0]  %s2426_s2, 80, %s46_s17, [#allocation6]  }
  0x31   :  { %s2267_s24 = smov [#allocation10]   ;;  %s2268_s26 = smov [#allocation11]  }
  0x32   :  { %s66_s25 = sshll.u32 %s2267_s24, 4  ;;  %s80_s27 = sshll.u32 %s2268_s26, 4  ;;  %s67_s25 = int_to_ptr.vmem [resolvable:$true] %s66_s25  ;;  %s81_s27 = int_to_ptr.vmem [resolvable:$true] %s80_s27 }
  0x33   :  { %s2197_s28 = scalar_lea.vmem %s67_s25, 512  ;;  %p2202_p7 = scmp.lt.s32.totalorder %s67_s25, %s67_s25 }
  0x34   :  { %p2198_p6 = scmp.ne.s32.totalorder %s67_s25, %s2197_s28  ;;  %p2203_p8 = scmp.lt.s32.totalorder %s2197_s28, %s2197_s28 }
  0x36   :  { %p2204_p9 = por %p2203_p8, %p2202_p7 }
  0x38   :  { %p2205_p10 = pnand %p2204_p9, %p2198_p6 }
  0x3a   :  { %2208 = shalt.err (!%p2205_p10)
}
  0x3b   :  { %72 = dma.hbm_to_vmem [thread:$0]  %s2428_s4, 512, %s67_s25, [#allocation9], %s2263_s11, %s2263_s11, %s2264_s12  }
  0x3c   :  { %s2217_s2 = scalar_lea.vmem %s81_s27, 16384  ;;  %p2222_p12 = scmp.lt.s32.totalorder %s81_s27, %s81_s27 }
  0x3d   :  { %p2218_p11 = scmp.ne.s32.totalorder %s81_s27, %s2217_s2  ;;  %p2223_p13 = scmp.lt.s32.totalorder %s2217_s2, %s2217_s2 }
  0x3f   :  { %p2224_p0 = por %p2223_p13, %p2222_p12 }
  0x41   :  { %p2225_p1 = pnand %p2224_p0, %p2218_p11 }
  0x43   :  { %2228 = shalt.err (!%p2225_p1)
}
  0x44   :  { %86 = dma.hbm_to_vmem [thread:$0]  %s2430_s6, 16384, %s81_s27, [#allocation12], %s2263_s11, %s2263_s11, %s2264_s12  }
  0x45   :  { %2249 = dma.done.wait [#allocation3], 128  }
  0x46   :  { %2250 = vsyncadd [#allocation3], 4294967168 }
  0x47   :  { %2251 = dma.done.wait [#allocation6], 720  }
  0x48   :  { %2252 = vsyncadd [#allocation6], 4294966576 }
  0x49   :  { %2253 = dma.done.wait [#allocation9], 4608  }
  0x4a   :  { %2254 = vsyncadd [#allocation9], 4294962688 }
  0x4b   :  { %2255 = dma.done.wait [#allocation12], 16384  }
  0x4c   :  { %2256 = vsyncadd [#allocation12], 4294950912  ;;  %v2269_v0 = vmov 0   ;;  %v1856_v1 = vld [vmem:[#allocation5 + $0x4] ss:$20 sps:$4 sm:$0xff]   ;;  %vm167_vm0 = vcmask 130048   ;;  %v116_v43 = vlaneseq }
  0x4d   :  { %203 = vmatprep.mubr.bf16.mxu0 %v2269_v0  ;;  %244 = vmatprep.mubr.bf16.mxu1 %v2269_v0  ;;  %v1858_v2 = vld [vmem:[#allocation5] ss:$20 sps:$4 sm:$0xff]   ;;  %v106_v3 = vld [vmem:[#allocation2] sm:$0xff]  ;;  %v1862_v7 = vld [vmem:[#allocation5 + $0x10] ss:$20 sps:$4 sm:$0xff]   ;;  %v2270_v8 = vmov 0.0  }
  0x4e   :  { %185 = vmatprep.subr.bf16.mxu0 %v1856_v1  ;;  %v2342_v4 = vpack.c.bf16 %v106_v3, %v106_v3  ;;  %v1859_v5 = vld [vmem:[#allocation5 + $0xc] ss:$20 sps:$4 sm:$0xff]   ;;  %v1861_v6 = vld [vmem:[#allocation5 + $0x8] ss:$20 sps:$4 sm:$0xff]   ;;  %vm2271_vm1 = vmmov 0   ;;  %v2352_v44 = vshrl.u32 %v116_v43, 7 }
  0x4f   :  { %186 = vmatpush1.bf16.msra.mxu0 %v1858_v2  ;;  %226 = vmatprep.subr.bf16.mxu1 %v1859_v5  ;;  %v1863_v9 = vld [vmem:[#allocation8 + $0xe0] ss:$16 sps:$4 sm:$0xff]   ;;  %v1865_v10 = vld [vmem:[#allocation8 + $0xe4] ss:$16 sps:$4 sm:$0xff]   ;;  %v1868_v11 = vld [vmem:[#allocation8 + $0xec] ss:$16 sps:$4 sm:$0xff]  }
  0x50   :  { %1836 = vmatprep.subr.bf16.mxu0 %v2270_v8  ;;  %227 = vmatpush1.bf16.msra.mxu1 %v1861_v6  ;;  %v1871_v12 = vld [vmem:[#allocation8 + $0xc4] ss:$16 sps:$4 sm:$0xff]   ;;  %v1869_v13 = vld [vmem:[#allocation8 + $0xc0] ss:$16 sps:$4 sm:$0xff]   ;;  %v1866_v15 = vld [vmem:[#allocation8 + $0xe8] ss:$16 sps:$4 sm:$0xff]  }
  0x51   :  { %487 = vmatprep.subr.bf16.mxu1 %v1865_v10  ;;  %v1877_v14 = vld [vmem:[#allocation8 + $0xa4] ss:$16 sps:$4 sm:$0xff]   ;;  %v1874_v16 = vld [vmem:[#allocation8 + $0xcc] ss:$16 sps:$4 sm:$0xff]   ;;  %v1875_v17 = vld [vmem:[#allocation8 + $0xa0] ss:$16 sps:$4 sm:$0xff]  }
  0x52   :  { %1665 = vmatmul.mubr.msk.bf16.vlgmr.msra.gmra.mxu0 %vm167_vm0, %v2342_v4  ;;  %v1883_v18 = vld [vmem:[#allocation8 + $0x84] ss:$16 sps:$4 sm:$0xff]   ;;  %v1872_v19 = vld [vmem:[#allocation8 + $0xc8] ss:$16 sps:$4 sm:$0xff]   ;;  %v1880_v20 = vld [vmem:[#allocation8 + $0xac] ss:$16 sps:$4 sm:$0xff]  }
  0x53   :  { %1837 = vmatpush3.bf16.msra.mxu0 %v1862_v7  ;;  %1838 = vmatprep.mubr.msk.bf16.mxu0 %vm2271_vm1, %v2270_v8  ;;  %v1881_v21 = vld [vmem:[#allocation8 + $0x80] ss:$16 sps:$4 sm:$0xff]   ;;  %v1889_v22 = vld [vmem:[#allocation8 + $0x64] ss:$16 sps:$4 sm:$0xff]   ;;  %v1878_v23 = vld [vmem:[#allocation8 + $0xa8] ss:$16 sps:$4 sm:$0xff]  }
  0x54   :  { %1666 = vmatmul.mubr.msk.bf16.vlgmr.msra.gmra.mxu1 %vm167_vm0, %v2342_v4  ;;  %528 = vmatprep.subr.bf16.mxu0 %v1868_v11  ;;  %v1886_v24 = vld [vmem:[#allocation8 + $0x8c] ss:$16 sps:$4 sm:$0xff]   ;;  %v1887_v25 = vld [vmem:[#allocation8 + $0x60] ss:$16 sps:$4 sm:$0xff]   ;;  %v1884_v26 = vld [vmem:[#allocation8 + $0x88] ss:$16 sps:$4 sm:$0xff]  }
  0x55   :  { %488 = vmatpush1.bf16.msra.mxu1 %v1863_v9  ;;  %519 = vmatprep.mubr.bf16.mxu1 %v2269_v0  ;;  %v1892_v27 = vld [vmem:[#allocation8 + $0x6c] ss:$16 sps:$4 sm:$0xff]   ;;  %v1895_v28 = vld [vmem:[#allocation8 + $0x44] ss:$16 sps:$4 sm:$0xff]   ;;  %v1893_v29 = vld [vmem:[#allocation8 + $0x40] ss:$16 sps:$4 sm:$0xff]  }
  0x56   :  { %489 = vmatprep.subr.bf16.mxu1 %v1871_v12  ;;  %v1901_v30 = vld [vmem:[#allocation8 + $0x24] ss:$16 sps:$4 sm:$0xff]   ;;  %v1890_v31 = vld [vmem:[#allocation8 + $0x68] ss:$16 sps:$4 sm:$0xff]   ;;  %v1898_v32 = vld [vmem:[#allocation8 + $0x4c] ss:$16 sps:$4 sm:$0xff]  }
  0x57   :  { %v1899_v33 = vld [vmem:[#allocation8 + $0x20] ss:$16 sps:$4 sm:$0xff]   ;;  %v1896_v34 = vld [vmem:[#allocation8 + $0x48] ss:$16 sps:$4 sm:$0xff]   ;;  %v1904_v35 = vld [vmem:[#allocation8 + $0x2c] ss:$16 sps:$4 sm:$0xff]  }
  0x58   :  { %v1902_v36 = vld [vmem:[#allocation8 + $0x28] ss:$16 sps:$4 sm:$0xff]   ;;  %v1907_v37 = vld [vmem:[#allocation8 + $0x4] ss:$16 sps:$4 sm:$0xff]   ;;  %v1910_v38 = vld [vmem:[#allocation8 + $0xc] ss:$16 sps:$4 sm:$0xff]  }
  0x59   :  { %490 = vmatpush1.bf16.msra.mxu1 %v1869_v13  ;;  %v1905_v39 = vld [vmem:[#allocation8] ss:$16 sps:$4 sm:$0xff]   ;;  %v1908_v40 = vld [vmem:[#allocation8 + $0x8] ss:$16 sps:$4 sm:$0xff]   ;;  %v1913_v41 = vld [vmem:[#allocation10 + $0x4] ss:$16 sps:$4 sm:$0xff]  }
  0x5a   :  { %1839 = vmatmul.mubr.msk.bf16.vlgmr.msra.gmra.mxu0 %vm167_vm0, %v2342_v4  ;;  %491 = vmatprep.subr.bf16.mxu1 %v1877_v14  ;;  %v1916_v42 = vld [vmem:[#allocation10 + $0xc] ss:$16 sps:$4 sm:$0xff]   ;;  %v118_v45 = vsub.s32 0, %v2352_v44  ;;  %v1911_v54 = vld [vmem:[#allocation10] ss:$16 sps:$4 sm:$0xff]   ;;  %vm1640_vm2 = vcmask 293888  }
  0x5b   :  { %529 = vmatpush1.bf16.msra.mxu0 %v1866_v15  ;;  %560 = vmatprep.mubr.bf16.mxu0 %v2269_v0  ;;  %v2355_v46 = vld [vmem:[#allocation7] sm:$0x1f]  ;;  %v1919_v59 = vld [vmem:[#allocation11 + $0xe4] ss:$16 sps:$4 sm:$0xff]   ;;  %v1917_v2 = vld [vmem:[#allocation11 + $0xe0] ss:$16 sps:$4 sm:$0xff]  }
  0x5c   :  { %530 = vmatprep.subr.bf16.mxu0 %v1874_v16  ;;  %v119_v47 = vrot.slane %v2355_v46, %v118_v45  ;;  %v1914_v57 = vld [vmem:[#allocation10 + $0x8] ss:$16 sps:$4 sm:$0xff]   ;;  %v1922_v60 = vld [vmem:[#allocation11 + $0x2e4] ss:$16 sps:$4 sm:$0xff]   ;;  %v1920_v3 = vld [vmem:[#allocation11 + $0x2e0] ss:$16 sps:$4 sm:$0xff]  }
  0x5d   :  { %492 = vmatpush1.bf16.msra.mxu1 %v1875_v17  ;;  %v1925_v6 = vld [vmem:[#allocation11 + $0xc4] ss:$16 sps:$4 sm:$0xff]   ;;  %v1923_v9 = vld [vmem:[#allocation11 + $0xc0] ss:$16 sps:$4 sm:$0xff]  }
  0x5e   :  { %493 = vmatprep.subr.bf16.mxu1 %v1883_v18  ;;  %v1928_v7 = vld [vmem:[#allocation11 + $0x2c4] ss:$16 sps:$4 sm:$0xff]   ;;  %v1926_v10 = vld [vmem:[#allocation11 + $0x2c0] ss:$16 sps:$4 sm:$0xff]  }
  0x5f   :  { %531 = vmatpush1.bf16.msra.mxu0 %v1872_v19  ;;  %v1934_v11 = vld [vmem:[#allocation11 + $0x2a4] ss:$16 sps:$4 sm:$0xff]   ;;  %v1929_v12 = vld [vmem:[#allocation11 + $0xa0] ss:$16 sps:$4 sm:$0xff]  }
  0x60   :  { %532 = vmatprep.subr.bf16.mxu0 %v1880_v20  ;;  %v1932_v13 = vld [vmem:[#allocation11 + $0x2a0] ss:$16 sps:$4 sm:$0xff]   ;;  %v1937_v14 = vld [vmem:[#allocation11 + $0x84] ss:$16 sps:$4 sm:$0xff]  }
  0x61   :  { %494 = vmatpush1.bf16.msra.mxu1 %v1881_v21  ;;  %v1940_v15 = vld [vmem:[#allocation11 + $0x284] ss:$16 sps:$4 sm:$0xff]   ;;  %v1935_v16 = vld [vmem:[#allocation11 + $0x80] ss:$16 sps:$4 sm:$0xff]  }
  0x62   :  { %495 = vmatprep.subr.bf16.mxu1 %v1889_v22  ;;  %v1943_v17 = vld [vmem:[#allocation11 + $0x64] ss:$16 sps:$4 sm:$0xff]   ;;  %v1941_v19 = vld [vmem:[#allocation11 + $0x60] ss:$16 sps:$4 sm:$0xff]  }
  0x63   :  { %533 = vmatpush1.bf16.msra.mxu0 %v1878_v23  ;;  %v1946_v18 = vld [vmem:[#allocation11 + $0x264] ss:$16 sps:$4 sm:$0xff]   ;;  %v1944_v20 = vld [vmem:[#allocation11 + $0x260] ss:$16 sps:$4 sm:$0xff]  }
  0x64   :  { %534 = vmatprep.subr.bf16.mxu0 %v1886_v24  ;;  %v1949_v21 = vld [vmem:[#allocation11 + $0x44] ss:$16 sps:$4 sm:$0xff]   ;;  %v1947_v23 = vld [vmem:[#allocation11 + $0x40] ss:$16 sps:$4 sm:$0xff]  }
  0x65   :  { %496 = vmatpush1.bf16.msra.mxu1 %v1887_v25  ;;  %v1952_v22 = vld [vmem:[#allocation11 + $0x244] ss:$16 sps:$4 sm:$0xff]   ;;  %v1950_v24 = vld [vmem:[#allocation11 + $0x240] ss:$16 sps:$4 sm:$0xff]  }
  0x66   :  { %497 = vmatprep.subr.bf16.mxu1 %v1895_v28  ;;  %v1955_v25 = vld [vmem:[#allocation11 + $0x24] ss:$16 sps:$4 sm:$0xff]   ;;  %v1956_v28 = vld [vmem:[#allocation11 + $0x220] ss:$16 sps:$4 sm:$0xff]  }
  0x67   :  { %535 = vmatpush1.bf16.msra.mxu0 %v1884_v26  ;;  %v1958_v26 = vld [vmem:[#allocation11 + $0x224] ss:$16 sps:$4 sm:$0xff]   ;;  %v1977_v43 = vld [vmem:[#allocation11 + $0x1a0] ss:$16 sps:$4 sm:$0xff]  }
  0x68   :  { %536 = vmatprep.subr.bf16.mxu0 %v1892_v27  ;;  %v1953_v27 = vld [vmem:[#allocation11 + $0x20] ss:$16 sps:$4 sm:$0xff]  }
  0x69   :  { %498 = vmatpush1.bf16.msra.mxu1 %v1893_v29  ;;  %v1961_v29 = vld [vmem:[#allocation11 + $0x4] ss:$16 sps:$4 sm:$0xff]  }
  0x6a   :  { %499 = vmatprep.subr.bf16.mxu1 %v1901_v30  ;;  %v1964_v30 = vld [vmem:[#allocation11 + $0x204] ss:$16 sps:$4 sm:$0xff]  }
  0x6b   :  { %537 = vmatpush1.bf16.msra.mxu0 %v1890_v31  ;;  %v1959_v31 = vld [vmem:[#allocation11] ss:$16 sps:$4 sm:$0xff]  }
  0x6c   :  { %538 = vmatprep.subr.bf16.mxu0 %v1898_v32  ;;  %v1962_v32 = vld [vmem:[#allocation11 + $0x200] ss:$16 sps:$4 sm:$0xff]  }
  0x6d   :  { %500 = vmatpush1.bf16.msra.mxu1 %v1899_v33  ;;  %v1967_v33 = vld [vmem:[#allocation11 + $0x1e4] ss:$16 sps:$4 sm:$0xff]  }
  0x6e   :  { %501 = vmatprep.subr.bf16.mxu1 %v1907_v37  ;;  %v1973_v37 = vld [vmem:[#allocation11 + $0x1c4] ss:$16 sps:$4 sm:$0xff]  }
  0x6f   :  { %539 = vmatpush1.bf16.msra.mxu0 %v1896_v34  ;;  %v1970_v34 = vld [vmem:[#allocation11 + $0x3e4] ss:$16 sps:$4 sm:$0xff]  }
  0x70   :  { %540 = vmatprep.subr.bf16.mxu0 %v1904_v35  ;;  %v1965_v35 = vld [vmem:[#allocation11 + $0x1e0] ss:$16 sps:$4 sm:$0xff]  }
  0x71   :  { %502 = vmatpush1.bf16.msra.mxu1 %v1905_v39  ;;  %v1971_v39 = vld [vmem:[#allocation11 + $0x1c0] ss:$16 sps:$4 sm:$0xff]  }
  0x72   :  { %637 = vmatprep.subr.bf16.mxu1 %v1913_v41  ;;  %v1979_v41 = vld [vmem:[#allocation11 + $0x1a4] ss:$16 sps:$4 sm:$0xff]  }
  0x73   :  { %541 = vmatpush1.bf16.msra.mxu0 %v1902_v36  ;;  %v1968_v36 = vld [vmem:[#allocation11 + $0x3e0] ss:$16 sps:$4 sm:$0xff]  }
  0x74   :  { %542 = vmatprep.subr.bf16.mxu0 %v1910_v38  ;;  %v1976_v38 = vld [vmem:[#allocation11 + $0x3c4] ss:$16 sps:$4 sm:$0xff]  }
  0x77   :  { %543 = vmatpush1.bf16.msra.mxu0 %v1908_v40  ;;  %v1974_v40 = vld [vmem:[#allocation11 + $0x3c0] ss:$16 sps:$4 sm:$0xff]  }
  0x78   :  { %678 = vmatprep.subr.bf16.mxu0 %v1916_v42  ;;  %v1982_v42 = vld [vmem:[#allocation11 + $0x3a4] ss:$16 sps:$4 sm:$0xff]  }
 0x112   :  { %v205_v48 = vpop.f32.mrf.mxu0 }
 0x113   :  { %v206_v49 = vadd.f32 %v205_v48, %v119_v47  ;;  %v1980_v47 = vld [vmem:[#allocation11 + $0x3a0] ss:$16 sps:$4 sm:$0xff]   ;;  %v1985_v48 = vld [vmem:[#allocation11 + $0x184] ss:$16 sps:$4 sm:$0xff]  }
 0x114   :  { %v2360_v50 = vpop.f32.mrf.mxu0  ;;  %v2362_v51 = vpop.f32.mrf.mxu1 }
 0x115   :  { %v293_v52 = vmax.f32 %v206_v49, 0.0  ;;  %v1988_v49 = vld [vmem:[#allocation11 + $0x384] ss:$16 sps:$4 sm:$0xff]  }
 0x116   :  { %v209_v53 = vpop.f32.mrf.mxu0  ;;  %v2364_v55 = vpop.f32.mrf.mxu1 }
 0x117   :  { %v294_v56 = vpack.c.bf16 %v293_v52, %v293_v52  ;;  %v1983_v52 = vld [vmem:[#allocation11 + $0x180] ss:$16 sps:$4 sm:$0xff]  }
 0x118   :  { %v210_v58 = vpop.f32.mrf.mxu0  ;;  %v250_v61 = vpop.f32.mrf.mxu1  ;;  %v1986_v53 = vld [vmem:[#allocation11 + $0x380] ss:$16 sps:$4 sm:$0xff]  }
 0x119   :  { %520 = vmatmul.mubr.bf16.vlgmr.msra.gmra.mxu1 %v294_v56  ;;  %561 = vmatmul.mubr.bf16.vlgmr.msra.gmra.mxu0 %v294_v56  ;;  %v1994_v56 = vld [vmem:[#allocation11 + $0x364] ss:$16 sps:$4 sm:$0xff]   ;;  %v1992_v58 = vld [vmem:[#allocation11 + $0x360] ss:$16 sps:$4 sm:$0xff]  }
 0x11a   :  { %638 = vmatpush1.bf16.msra.mxu1 %v1911_v54  ;;  %655 = vmatprep.mubr.bf16.mxu1 %v2269_v0  ;;  %v2367_v62 = vpop.f32.mrf.mxu0  ;;  %v251_v63 = vpop.f32.mrf.mxu1  ;;  %v1991_v54 = vld [vmem:[#allocation11 + $0x164] ss:$16 sps:$4 sm:$0xff]   ;;  %v1995_v61 = vld [vmem:[#allocation11 + $0x140] ss:$16 sps:$4 sm:$0xff]  }
 0x11b   :  { %679 = vmatpush1.bf16.msra.mxu0 %v1914_v57  ;;  %696 = vmatprep.mubr.bf16.mxu0 %v2269_v0  ;;  %v1931_v0 = vld [vmem:[#allocation11 + $0xa4] ss:$16 sps:$4 sm:$0xff]   ;;  %v1989_v57 = vld [vmem:[#allocation11 + $0x160] ss:$16 sps:$4 sm:$0xff]  }
 0x11c   :  { %1473 = vmatprep.subr.bf16.mxu1 %v1919_v59  ;;  %1514 = vmatprep.subr.bf16.mxu0 %v1922_v60  ;;  %v1840_v1 = vpop.f32.mrf.mxu0  ;;  %v1997_v59 = vld [vmem:[#allocation11 + $0x144] ss:$16 sps:$4 sm:$0xff]   ;;  %v1998_v63 = vld [vmem:[#allocation11 + $0x340] ss:$16 sps:$4 sm:$0xff]  }
 0x11d   :  { %v2000_v60 = vld [vmem:[#allocation11 + $0x344] ss:$16 sps:$4 sm:$0xff]  }
 0x11e   :  { %v290_v5 = vpop.f32.mrf.mxu0  ;;  %v2003_v1 = vld [vmem:[#allocation11 + $0x124] ss:$16 sps:$4 sm:$0xff]  }
 0x11f   :  { %v2004_v5 = vld [vmem:[#allocation11 + $0x320] ss:$16 sps:$4 sm:$0xff]  }
 0x120   :  { %v1841_v8 = vpop.f32.mrf.mxu0 }
 0x121   :  { %1704 = vmatmul.mubr.msk.bf16.vlgmr.msra.gmra.mxu1 %vm167_vm0, %v2342_v4  ;;  %1705 = vmatmul.mubr.msk.bf16.vlgmr.msra.gmra.mxu0 %vm167_vm0, %v2342_v4  ;;  %v1938_v4 = vld [vmem:[#allocation11 + $0x280] ss:$16 sps:$4 sm:$0xff]  }
 0x122   :  { %1474 = vmatpush1.bf16.msra.mxu1 %v1917_v2  ;;  %1515 = vmatpush1.bf16.msra.mxu0 %v1920_v3  ;;  %v2006_v2 = vld [vmem:[#allocation11 + $0x324] ss:$16 sps:$4 sm:$0xff]   ;;  %v2001_v3 = vld [vmem:[#allocation11 + $0x120] ss:$16 sps:$4 sm:$0xff]  }
 0x123   :  { %1475 = vmatprep.subr.bf16.mxu1 %v1925_v6  ;;  %1516 = vmatprep.subr.bf16.mxu0 %v1928_v7  ;;  %v2009_v6 = vld [vmem:[#allocation11 + $0x104] ss:$16 sps:$4 sm:$0xff]   ;;  %v2007_v8 = vld [vmem:[#allocation11 + $0x100] ss:$16 sps:$4 sm:$0xff]  }
 0x124   :  { %v2012_v7 = vld [vmem:[#allocation11 + $0x304] ss:$16 sps:$4 sm:$0xff]  }
 0x126   :  { %1476 = vmatpush1.bf16.msra.mxu1 %v1923_v9  ;;  %1517 = vmatpush1.bf16.msra.mxu0 %v1926_v10  ;;  %v2010_v9 = vld [vmem:[#allocation11 + $0x300] ss:$16 sps:$4 sm:$0xff]   ;;  %v2015_v10 = vld [vmem:[#allocation11 + $0xec] ss:$16 sps:$4 sm:$0xff]  }
 0x127   :  { %1477 = vmatprep.subr.bf16.mxu1 %v1931_v0  ;;  %1518 = vmatprep.subr.bf16.mxu0 %v1934_v11  ;;  %v2018_v0 = vld [vmem:[#allocation11 + $0x2ec] ss:$16 sps:$4 sm:$0xff]   ;;  %v122_v11 = vsub.s32 1, %v2352_v44 }
 0x12a   :  { %1478 = vmatpush1.bf16.msra.mxu1 %v1929_v12  ;;  %1519 = vmatpush1.bf16.msra.mxu0 %v1932_v13  ;;  %v130_v12 = vsub.s32 3, %v2352_v44  ;;  %v126_v13 = vsub.s32 2, %v2352_v44 }
 0x12b   :  { %1479 = vmatprep.subr.bf16.mxu1 %v1937_v14  ;;  %1520 = vmatprep.subr.bf16.mxu0 %v1940_v15  ;;  %v134_v14 = vsub.s32 4, %v2352_v44  ;;  %v123_v15 = vrot.slane %v2355_v46, %v122_v11 }
 0x12e   :  { %1480 = vmatpush1.bf16.msra.mxu1 %v1935_v16  ;;  %1521 = vmatpush1.bf16.msra.mxu0 %v1938_v4  ;;  %v131_v16 = vrot.slane %v2355_v46, %v130_v12  ;;  %v127_v4 = vrot.slane %v2355_v46, %v126_v13 }
 0x12f   :  { %1481 = vmatprep.subr.bf16.mxu1 %v1943_v17  ;;  %1522 = vmatprep.subr.bf16.mxu0 %v1946_v18  ;;  %v135_v17 = vrot.slane %v2355_v46, %v134_v14  ;;  %v208_v18 = vadd.f32 %v2360_v50, %v123_v15  ;;  %v2391_v50 = vld [vmem:[%s2429_s5] sm:$0xf]  ;;  %s2272_s5 = smov [#allocation13]  }
 0x130   :  { %v2048_v14 = vld [vmem:[#allocation11 + $0x24c] ss:$16 sps:$4 sm:$0xff]   ;;  %v2043_v15 = vld [vmem:[#allocation11 + $0x48] ss:$16 sps:$4 sm:$0xff]   ;;  %s1648_s9 = sshll.u32 %s2272_s5, 4  ;;  %s1649_s9 = int_to_ptr.vmem [resolvable:$true] %s1648_s9 }
 0x131   :  { %s2229_s10 = scalar_lea.vmem %s1649_s9, 512  ;;  %p2234_p3 = scmp.lt.s32.totalorder %s1649_s9, %s1649_s9 }
 0x132   :  { %1482 = vmatpush1.bf16.msra.mxu1 %v1941_v19  ;;  %1523 = vmatpush1.bf16.msra.mxu0 %v1944_v20  ;;  %v249_v19 = vadd.f32 %v2364_v55, %v131_v16  ;;  %v2046_v16 = vld [vmem:[#allocation11 + $0x248] ss:$16 sps:$4 sm:$0xff]   ;;  %p2230_p2 = scmp.ne.s32.totalorder %s1649_s9, %s2229_s10  ;;  %p2235_p4 = scmp.lt.s32.totalorder %s2229_s10, %s2229_s10 }
 0x133   :  { %1483 = vmatprep.subr.bf16.mxu1 %v1949_v21  ;;  %1524 = vmatprep.subr.bf16.mxu0 %v1952_v22  ;;  %v247_v22 = vadd.f32 %v2362_v51, %v127_v4  ;;  %v594_v51 = vrot.slane %v2391_v50, %v126_v13  ;;  %v2045_v13 = vld [vmem:[#allocation11 + $0x4c] ss:$16 sps:$4 sm:$0xff]  }
 0x134   :  { %v2051_v4 = vld [vmem:[#allocation11 + $0x2c] ss:$16 sps:$4 sm:$0xff]   ;;  %p2236_p5 = por %p2235_p4, %p2234_p3 }
 0x136   :  { %1484 = vmatpush1.bf16.msra.mxu1 %v1947_v23  ;;  %1525 = vmatpush1.bf16.msra.mxu0 %v1950_v24  ;;  %v288_v23 = vadd.f32 %v2367_v62, %v135_v17  ;;  %v2054_v17 = vld [vmem:[#allocation11 + $0x22c] ss:$16 sps:$4 sm:$0xff]   ;;  %p2237_p6 = pnand %p2236_p5, %p2230_p2 }
 0x137   :  { %1485 = vmatprep.subr.bf16.mxu1 %v1955_v25  ;;  %1526 = vmatprep.subr.bf16.mxu0 %v1958_v26 }
 0x13a   :  { %1486 = vmatpush1.bf16.msra.mxu1 %v1953_v27  ;;  %1527 = vmatpush1.bf16.msra.mxu0 %v1956_v28 }
 0x13b   :  { %1487 = vmatprep.subr.bf16.mxu1 %v1961_v29  ;;  %1528 = vmatprep.subr.bf16.mxu0 %v1964_v30 }
 0x13e   :  { %1488 = vmatpush1.bf16.msra.mxu1 %v1959_v31  ;;  %1529 = vmatpush1.bf16.msra.mxu0 %v1962_v32 }
 0x13f   :  { %1489 = vmatprep.subr.bf16.mxu1 %v1967_v33  ;;  %1530 = vmatprep.subr.bf16.mxu0 %v1970_v34 }
 0x142   :  { %1490 = vmatpush2.bf16.msra.mxu1 %v1965_v35  ;;  %1531 = vmatpush2.bf16.msra.mxu0 %v1968_v36 }
 0x143   :  { %1491 = vmatprep.subr.bf16.mxu1 %v1973_v37  ;;  %1532 = vmatprep.subr.bf16.mxu0 %v1976_v38  ;;  %v2013_v37 = vld [vmem:[#allocation11 + $0xe8] ss:$16 sps:$4 sm:$0xff]  }
 0x144   :  { %v2016_v38 = vld [vmem:[#allocation11 + $0x2e8] ss:$16 sps:$4 sm:$0xff]  }
 0x146   :  { %1492 = vmatpush2.bf16.msra.mxu1 %v1971_v39  ;;  %1533 = vmatpush2.bf16.msra.mxu0 %v1974_v40  ;;  %v598_v39 = vrot.slane %v2391_v50, %v130_v12  ;;  %v2040_v12 = vld [vmem:[#allocation11 + $0x268] ss:$16 sps:$4 sm:$0xff]  }
 0x147   :  { %1493 = vmatprep.subr.bf16.mxu1 %v1979_v41  ;;  %1534 = vmatprep.subr.bf16.mxu0 %v1982_v42 }
 0x14a   :  { %1494 = vmatpush2.bf16.msra.mxu1 %v1977_v43  ;;  %1535 = vmatpush2.bf16.msra.mxu0 %v1980_v47  ;;  %v2021_v47 = vld [vmem:[#allocation11 + $0xcc] ss:$16 sps:$4 sm:$0xff]  }
 0x14b   :  { %1495 = vmatprep.subr.bf16.mxu1 %v1985_v48  ;;  %1536 = vmatprep.subr.bf16.mxu0 %v1988_v49  ;;  %v2024_v48 = vld [vmem:[#allocation11 + $0x2cc] ss:$16 sps:$4 sm:$0xff]  }
 0x14e   :  { %1496 = vmatpush2.bf16.msra.mxu1 %v1983_v52  ;;  %1537 = vmatpush2.bf16.msra.mxu0 %v1986_v53 }
 0x14f   :  { %1497 = vmatprep.subr.bf16.mxu1 %v1991_v54  ;;  %1538 = vmatprep.subr.bf16.mxu0 %v1994_v56  ;;  %v2019_v54 = vld [vmem:[#allocation11 + $0xc8] ss:$16 sps:$4 sm:$0xff]  }
 0x150   :  { %v2022_v56 = vld [vmem:[#allocation11 + $0x2c8] ss:$16 sps:$4 sm:$0xff]  }
 0x152   :  { %1498 = vmatpush2.bf16.msra.mxu1 %v1989_v57  ;;  %1539 = vmatpush2.bf16.msra.mxu0 %v1992_v58  ;;  %v2027_v58 = vld [vmem:[#allocation11 + $0xac] ss:$16 sps:$4 sm:$0xff]  }
 0x153   :  { %1499 = vmatprep.subr.bf16.mxu1 %v1997_v59  ;;  %1540 = vmatprep.subr.bf16.mxu0 %v2000_v60  ;;  %v2030_v59 = vld [vmem:[#allocation11 + $0x2ac] ss:$16 sps:$4 sm:$0xff]  }
 0x156   :  { %1500 = vmatpush2.bf16.msra.mxu1 %v1995_v61  ;;  %1541 = vmatpush2.bf16.msra.mxu0 %v1998_v63 }
 0x157   :  { %1501 = vmatprep.subr.bf16.mxu1 %v2003_v1  ;;  %1542 = vmatprep.subr.bf16.mxu0 %v2006_v2  ;;  %v2025_v2 = vld [vmem:[#allocation11 + $0xa8] ss:$16 sps:$4 sm:$0xff]  }
 0x15a   :  { %1502 = vmatpush2.bf16.msra.mxu1 %v2001_v3  ;;  %1543 = vmatpush2.bf16.msra.mxu0 %v2004_v5  ;;  %v2028_v3 = vld [vmem:[#allocation11 + $0x2a8] ss:$16 sps:$4 sm:$0xff]   ;;  %v2033_v5 = vld [vmem:[#allocation11 + $0x8c] ss:$16 sps:$4 sm:$0xff]  }
 0x15b   :  { %1503 = vmatprep.subr.bf16.mxu1 %v2009_v6  ;;  %1544 = vmatprep.subr.bf16.mxu0 %v2012_v7  ;;  %v2036_v6 = vld [vmem:[#allocation11 + $0x28c] ss:$16 sps:$4 sm:$0xff]   ;;  %v2031_v7 = vld [vmem:[#allocation11 + $0x88] ss:$16 sps:$4 sm:$0xff]  }
 0x15e   :  { %1504 = vmatpush2.bf16.msra.mxu1 %v2007_v8  ;;  %1545 = vmatpush2.bf16.msra.mxu0 %v2010_v9  ;;  %v2034_v8 = vld [vmem:[#allocation11 + $0x288] ss:$16 sps:$4 sm:$0xff]   ;;  %v2039_v9 = vld [vmem:[#allocation11 + $0x6c] ss:$16 sps:$4 sm:$0xff]  }
 0x15f   :  { %1555 = vmatprep.subr.bf16.mxu1 %v2015_v10  ;;  %1596 = vmatprep.subr.bf16.mxu0 %v2018_v0  ;;  %v2042_v10 = vld [vmem:[#allocation11 + $0x26c] ss:$16 sps:$4 sm:$0xff]   ;;  %v2037_v0 = vld [vmem:[#allocation11 + $0x68] ss:$16 sps:$4 sm:$0xff]  }
 0x1d9   :  { %v521_v20 = vpop.f32.mrf.mxu1  ;;  %v562_v21 = vpop.f32.mrf.mxu0 }
 0x1da   :  { %v522_v24 = vadd.f32 %v521_v20, %v208_v18  ;;  %v563_v25 = vadd.f32 %v562_v21, %v249_v19  ;;  %v2049_v18 = vld [vmem:[#allocation11 + $0x28] ss:$16 sps:$4 sm:$0xff]   ;;  %v2057_v20 = vld [vmem:[#allocation11 + $0xc] ss:$16 sps:$4 sm:$0xff]  }
 0x1db   :  { %v523_v26 = vpop.f32.mrf.mxu1  ;;  %v564_v27 = vpop.f32.mrf.mxu0  ;;  %v2052_v19 = vld [vmem:[#allocation11 + $0x228] ss:$16 sps:$4 sm:$0xff]   ;;  %v2060_v21 = vld [vmem:[#allocation11 + $0x20c] ss:$16 sps:$4 sm:$0xff]  }
 0x1dc   :  { %v524_v28 = vadd.f32 %v523_v26, %v247_v22  ;;  %v565_v29 = vadd.f32 %v564_v27, %v288_v23  ;;  %v569_v30 = vmax.f32 %v522_v24, 0.0  ;;  %v571_v31 = vmax.f32 %v563_v25, 0.0  ;;  %v2055_v22 = vld [vmem:[#allocation11 + $0x8] ss:$16 sps:$4 sm:$0xff]   ;;  %v2063_v24 = vld [vmem:[#allocation11 + $0x1ec] ss:$16 sps:$4 sm:$0xff]  }
 0x1dd   :  { %v525_v32 = vpop.f32.mrf.mxu1  ;;  %v566_v46 = vpop.f32.mrf.mxu0  ;;  %v2058_v23 = vld [vmem:[#allocation11 + $0x208] ss:$16 sps:$4 sm:$0xff]   ;;  %v2066_v25 = vld [vmem:[#allocation11 + $0x3ec] ss:$16 sps:$4 sm:$0xff]  }
 0x1de   :  { %v570_v55 = vmax.f32 %v524_v28, 0.0  ;;  %v572_v33 = vmax.f32 %v565_v29, 0.0  ;;  %v2395_v40 = vpack.c.bf16 %v569_v30, %v569_v30  ;;  %v2397_v41 = vpack.c.bf16 %v571_v31, %v571_v31  ;;  %v2061_v26 = vld [vmem:[#allocation11 + $0x1e8] ss:$16 sps:$4 sm:$0xff]   ;;  %v2069_v28 = vld [vmem:[#allocation11 + $0x1cc] ss:$16 sps:$4 sm:$0xff]  }
 0x1df   :  { %v526_v62 = vpop.f32.mrf.mxu1  ;;  %v567_v34 = vpop.f32.mrf.mxu0  ;;  %v2064_v27 = vld [vmem:[#allocation11 + $0x3e8] ss:$16 sps:$4 sm:$0xff]   ;;  %v2072_v29 = vld [vmem:[#allocation11 + $0x3cc] ss:$16 sps:$4 sm:$0xff]  }
 0x1e0   :  { %v574_v35 = vpack.c.bf16 %v570_v55, %v570_v55  ;;  %v576_v36 = vpack.c.bf16 %v572_v33, %v572_v33  ;;  %v2067_v30 = vld [vmem:[#allocation11 + $0x1c8] ss:$16 sps:$4 sm:$0xff]   ;;  %v2075_v32 = vld [vmem:[#allocation11 + $0x1ac] ss:$16 sps:$4 sm:$0xff]  }
 0x1e1   :  { %v2399_v42 = vpop.f32.mrf.mxu1  ;;  %v698_v43 = vpop.f32.mrf.mxu0  ;;  %v2070_v31 = vld [vmem:[#allocation11 + $0x3c8] ss:$16 sps:$4 sm:$0xff]   ;;  %v2078_v46 = vld [vmem:[#allocation11 + $0x3ac] ss:$16 sps:$4 sm:$0xff]  }
 0x1e2   :  { %1505 = vmatprep.mubr.bf16.mxu1 %v574_v35  ;;  %1546 = vmatprep.mubr.bf16.mxu0 %v576_v36  ;;  %v2401_v49 = vadd.f32 %v698_v43, %v594_v51  ;;  %v2073_v55 = vld [vmem:[#allocation11 + $0x1a8] ss:$16 sps:$4 sm:$0xff]   ;;  %v2081_v51 = vld [vmem:[#allocation11 + $0x18c] ss:$16 sps:$4 sm:$0xff]  }
 0x1e3   :  { %1506 = vmatmul.mubr.bf16.vlgmr.msra.gmra.mxu1 %v2395_v40  ;;  %1547 = vmatmul.mubr.bf16.vlgmr.msra.gmra.mxu0 %v2397_v41  ;;  %v2405_v52 = vpop.f32.mrf.mxu1  ;;  %v700_v53 = vpop.f32.mrf.mxu0  ;;  %v2076_v33 = vld [vmem:[#allocation11 + $0x3a8] ss:$16 sps:$4 sm:$0xff]   ;;  %v2084_v62 = vld [vmem:[#allocation11 + $0x38c] ss:$16 sps:$4 sm:$0xff]  }
 0x1e4   :  { %1556 = vmatpush1.bf16.msra.mxu1 %v2013_v37  ;;  %1597 = vmatpush1.bf16.msra.mxu0 %v2016_v38  ;;  %v2407_v57 = vadd.f32 %v700_v53, %v598_v39  ;;  %v2079_v34 = vld [vmem:[#allocation11 + $0x188] ss:$16 sps:$4 sm:$0xff]   ;;  %v2090_v37 = vld [vmem:[#allocation11 + $0x36c] ss:$16 sps:$4 sm:$0xff]  }
 0x1e5   :  { %1587 = vmatprep.mubr.bf16.mxu1 %v574_v35  ;;  %1628 = vmatprep.mubr.bf16.mxu0 %v576_v36  ;;  %v661_v60 = vpop.f32.mrf.mxu1  ;;  %v702_v61 = vpop.f32.mrf.mxu0  ;;  %v2082_v35 = vld [vmem:[#allocation11 + $0x388] ss:$16 sps:$4 sm:$0xff]   ;;  %v2087_v36 = vld [vmem:[#allocation11 + $0x16c] ss:$16 sps:$4 sm:$0xff]  }
 0x1e6   :  { %1557 = vmatprep.subr.bf16.mxu1 %v2021_v47  ;;  %1598 = vmatprep.subr.bf16.mxu0 %v2024_v48  ;;  %v2085_v38 = vld [vmem:[#allocation11 + $0x168] ss:$16 sps:$4 sm:$0xff]   ;;  %v2093_v43 = vld [vmem:[#allocation11 + $0x14c] ss:$16 sps:$4 sm:$0xff]  }
 0x1e7   :  { %v662_v63 = vpop.f32.mrf.mxu1  ;;  %v703_v1 = vpop.f32.mrf.mxu0  ;;  %v2088_v39 = vld [vmem:[#allocation11 + $0x368] ss:$16 sps:$4 sm:$0xff]   ;;  %v2096_v47 = vld [vmem:[#allocation11 + $0x34c] ss:$16 sps:$4 sm:$0xff]  }
 0x1e8   :  { %1558 = vmatpush1.bf16.msra.mxu1 %v2019_v54  ;;  %1599 = vmatpush1.bf16.msra.mxu0 %v2022_v56  ;;  %v2091_v48 = vld [vmem:[#allocation11 + $0x148] ss:$16 sps:$4 sm:$0xff]   ;;  %v2099_v54 = vld [vmem:[#allocation11 + $0x12c] ss:$16 sps:$4 sm:$0xff]  }
 0x1e9   :  { %1559 = vmatprep.subr.bf16.mxu1 %v2027_v58  ;;  %1600 = vmatprep.subr.bf16.mxu0 %v2030_v59  ;;  %v2094_v53 = vld [vmem:[#allocation11 + $0x348] ss:$16 sps:$4 sm:$0xff]   ;;  %v2102_v56 = vld [vmem:[#allocation11 + $0x32c] ss:$16 sps:$4 sm:$0xff]  }
 0x1ea   :  { %v2097_v58 = vld [vmem:[#allocation11 + $0x128] ss:$16 sps:$4 sm:$0xff]   ;;  %v2105_v60 = vld [vmem:[#allocation11 + $0x10c] ss:$16 sps:$4 sm:$0xff]  }
 0x1eb   :  { %v2100_v59 = vld [vmem:[#allocation11 + $0x328] ss:$16 sps:$4 sm:$0xff]   ;;  %v2108_v61 = vld [vmem:[#allocation11 + $0x30c] ss:$16 sps:$4 sm:$0xff]  }
 0x1ec   :  { %1560 = vmatpush1.bf16.msra.mxu1 %v2025_v2  ;;  %1601 = vmatpush1.bf16.msra.mxu0 %v2028_v3  ;;  %v2103_v63 = vld [vmem:[#allocation11 + $0x108] ss:$16 sps:$4 sm:$0xff]   ;;  %v586_v2 = vrot.slane %v2391_v50, %v118_v45  ;;  %v590_v3 = vrot.slane %v2391_v50, %v122_v11 }
 0x1ed   :  { %1561 = vmatprep.subr.bf16.mxu1 %v2033_v5  ;;  %1602 = vmatprep.subr.bf16.mxu0 %v2036_v6  ;;  %v2106_v1 = vld [vmem:[#allocation11 + $0x308] ss:$16 sps:$4 sm:$0xff]  }
 0x1ee   :  { %v658_v5 = vadd.f32 %v2399_v42, %v586_v2 }
 0x1f0   :  { %1562 = vmatpush1.bf16.msra.mxu1 %v2031_v7  ;;  %1603 = vmatpush1.bf16.msra.mxu0 %v2034_v8  ;;  %v660_v8 = vadd.f32 %v2405_v52, %v590_v3 }
 0x1f1   :  { %1563 = vmatprep.subr.bf16.mxu1 %v2039_v9  ;;  %1604 = vmatprep.subr.bf16.mxu0 %v2042_v10 }
 0x1f4   :  { %1564 = vmatpush1.bf16.msra.mxu1 %v2037_v0  ;;  %1605 = vmatpush1.bf16.msra.mxu0 %v2040_v12 }
 0x1f5   :  { %1565 = vmatprep.subr.bf16.mxu1 %v2045_v13  ;;  %1606 = vmatprep.subr.bf16.mxu0 %v2048_v14 }
 0x1f8   :  { %1566 = vmatpush1.bf16.msra.mxu1 %v2043_v15  ;;  %1607 = vmatpush1.bf16.msra.mxu0 %v2046_v16 }
 0x1f9   :  { %1567 = vmatprep.subr.bf16.mxu1 %v2051_v4  ;;  %1608 = vmatprep.subr.bf16.mxu0 %v2054_v17 }
 0x1fc   :  { %1568 = vmatpush1.bf16.msra.mxu1 %v2049_v18  ;;  %1609 = vmatpush1.bf16.msra.mxu0 %v2052_v19 }
 0x1fd   :  { %1569 = vmatprep.subr.bf16.mxu1 %v2057_v20  ;;  %1610 = vmatprep.subr.bf16.mxu0 %v2060_v21 }
 0x200   :  { %1570 = vmatpush1.bf16.msra.mxu1 %v2055_v22  ;;  %1611 = vmatpush1.bf16.msra.mxu0 %v2058_v23 }
 0x201   :  { %1571 = vmatprep.subr.bf16.mxu1 %v2063_v24  ;;  %1612 = vmatprep.subr.bf16.mxu0 %v2066_v25 }
 0x204   :  { %1572 = vmatpush2.bf16.msra.mxu1 %v2061_v26  ;;  %1613 = vmatpush2.bf16.msra.mxu0 %v2064_v27 }
 0x205   :  { %1573 = vmatprep.subr.bf16.mxu1 %v2069_v28  ;;  %1614 = vmatprep.subr.bf16.mxu0 %v2072_v29 }
 0x208   :  { %1574 = vmatpush2.bf16.msra.mxu1 %v2067_v30  ;;  %1615 = vmatpush2.bf16.msra.mxu0 %v2070_v31 }
 0x209   :  { %1575 = vmatprep.subr.bf16.mxu1 %v2075_v32  ;;  %1616 = vmatprep.subr.bf16.mxu0 %v2078_v46 }
 0x20c   :  { %1576 = vmatpush2.bf16.msra.mxu1 %v2073_v55  ;;  %1617 = vmatpush2.bf16.msra.mxu0 %v2076_v33 }
 0x20d   :  { %1577 = vmatprep.subr.bf16.mxu1 %v2081_v51  ;;  %1618 = vmatprep.subr.bf16.mxu0 %v2084_v62 }
 0x210   :  { %1578 = vmatpush2.bf16.msra.mxu1 %v2079_v34  ;;  %1619 = vmatpush2.bf16.msra.mxu0 %v2082_v35 }
 0x211   :  { %1579 = vmatprep.subr.bf16.mxu1 %v2087_v36  ;;  %1620 = vmatprep.subr.bf16.mxu0 %v2090_v37 }
 0x214   :  { %1580 = vmatpush2.bf16.msra.mxu1 %v2085_v38  ;;  %1621 = vmatpush2.bf16.msra.mxu0 %v2088_v39 }
 0x215   :  { %1581 = vmatprep.subr.bf16.mxu1 %v2093_v43  ;;  %1622 = vmatprep.subr.bf16.mxu0 %v2096_v47 }
 0x218   :  { %1582 = vmatpush2.bf16.msra.mxu1 %v2091_v48  ;;  %1623 = vmatpush2.bf16.msra.mxu0 %v2094_v53 }
 0x219   :  { %1583 = vmatprep.subr.bf16.mxu1 %v2099_v54  ;;  %1624 = vmatprep.subr.bf16.mxu0 %v2102_v56 }
 0x21c   :  { %1584 = vmatpush2.bf16.msra.mxu1 %v2097_v58  ;;  %1625 = vmatpush2.bf16.msra.mxu0 %v2100_v59 }
 0x21d   :  { %1585 = vmatprep.subr.bf16.mxu1 %v2105_v60  ;;  %1626 = vmatprep.subr.bf16.mxu0 %v2108_v61 }
 0x220   :  { %1586 = vmatpush2.bf16.msra.mxu1 %v2103_v63  ;;  %1627 = vmatpush2.bf16.msra.mxu0 %v2106_v1 }
 0x223   :  { %1588 = vmatmul.mubr.bf16.vlgmr.msra.gmra.mxu1 %v2395_v40  ;;  %1629 = vmatmul.mubr.bf16.vlgmr.msra.gmra.mxu0 %v2397_v41 }
 0x2a3   :  { %v1507_v6 = vpop.f32.mrf.mxu1  ;;  %v1548_v7 = vpop.f32.mrf.mxu0 }
 0x2a4   :  { %v1508_v9 = vadd.f32 %v1507_v6, %v658_v5 }
 0x2a5   :  { %v1509_v10 = vpop.f32.mrf.mxu1  ;;  %v1550_v0 = vpop.f32.mrf.mxu0 }
 0x2a6   :  { %v1549_v40 = vadd.f32 %v1548_v7, %v1508_v9  ;;  %v1510_v12 = vadd.f32 %v1509_v10, %v660_v8 }
 0x2a7   :  { %v1511_v41 = vpop.f32.mrf.mxu1  ;;  %v1552_v13 = vpop.f32.mrf.mxu0 }
 0x2a8   :  { %1637 = vst [vmem:[#allocation13] sm:$0xff] %v1549_v40  ;;  %v1551_v14 = vadd.f32 %v1550_v0, %v1510_v12 }
 0x2a9   :  { %v1512_v45 = vpop.f32.mrf.mxu1  ;;  %v1553_v15 = vpop.f32.mrf.mxu0 }
 0x2aa   :  { %1638 = vst [vmem:[#allocation13 + $0x8] sm:$0xff] %v1551_v14 }
 0x2e3   :  { %v1589_v44 = vpop.f32.mrf.mxu1  ;;  %v1630_v11 = vpop.f32.mrf.mxu0 }
 0x2e4   :  { %v1590_v50 = vadd.f32 %v1589_v44, %v2401_v49 }
 0x2e5   :  { %v1591_v42 = vpop.f32.mrf.mxu1  ;;  %v1632_v16 = vpop.f32.mrf.mxu0 }
 0x2e6   :  { %v1631_v52 = vadd.f32 %v1630_v11, %v1590_v50  ;;  %v1592_v4 = vadd.f32 %v1591_v42, %v2407_v57 }
 0x2e7   :  { %v1593_v17 = vpop.f32.mrf.mxu1  ;;  %v1634_v18 = vpop.f32.mrf.mxu0 }
 0x2e8   :  { %1639 = vst [vmem:[#allocation13 + $0x10] sm:$0xff] %v1631_v52  ;;  %v1633_v19 = vadd.f32 %v1632_v16, %v1592_v4 }
 0x2e9   :  { %v1594_v20 = vpop.f32.mrf.mxu1  ;;  %v1635_v21 = vpop.f32.mrf.mxu0 }
 0x2ea   :  { %1641 = vst.msk [vmem:[#allocation13 + $0x18] sm:$0xff] %vm1640_vm2, %v1633_v19 }
 0x2eb   :  { %2240 = shalt.err (!%p2237_p6)
}
 0x2ec   :  { %1651 = dma.vmem_to_hbm [thread:$0]  %s1649_s9, 512, %s2431_s7, [#allocation4]  }
 0x2ed   :  { %2257 = dma.done.wait [#allocation4], 512  }
 0x2ee   :  { %2258 = vsyncadd [#allocation4], 4294966784 }
 0x2ef   :  { %1655 = vsyncpa [#allocation3], 1 }
 0x2f0   :  { %1656 = vsyncpa [#allocation6], 1 }
 0x2f1   :  { %1657 = vsyncpa [#allocation9], 1 }
 0x2f2   :  { %1658 = vsyncpa [#allocation12], 1 }
 0x2f3   :  { %1659 = vsyncpa [#allocation4], 1 }

</bundles_post_ra>
